<compile_context>
chip_gen: v6e
topology: v6e:2x2x1
jax: 0.10.0
libtpu: 0.0.40
codegen_flags: <defaults>
</compile_context>

<pallas_src>
import functools
import math

import jax
import jax.numpy as jnp
from jax.experimental import pallas as pl
from jax.experimental.pallas import tpu as pltpu


# ----------------------------------------------------------------------------
# Fused kernel: conv1+ReLU -> conv2+ReLU -> conv3+ReLU (pre-scaled 1/3) -> sum-pool(3)
# ----------------------------------------------------------------------------
def _gaze_encoder_kernel(x_ref, w1_ref, w23_ref, b_ref, o_ref, xpad_ref, *, L, K, C):
    pad = (K - 1) // 2
    B = x_ref.shape[0]
    Cin = x_ref.shape[-1]
    Lp = L // 3

    # ---- layer 1 (cin = Cin, tiny): value-level per-sample im2col ----------
    # Padding stays per-sample: each sample's slab is built (with its own zero
    # halo) before stacking, so no cross-sample leakage in the fused matmul.
    zeros = jnp.zeros((pad, Cin), jnp.float32)
    slabs = []
    for bi in range(B):
        xb = x_ref[bi].astype(jnp.float32)                         # (L, Cin)
        xp = jnp.concatenate([zeros, xb, zeros], axis=0)           # (L+K-1, Cin)
        slabs.append(jnp.concatenate([xp[k:k + L, :] for k in range(K)], axis=-1))
    cols = jnp.concatenate(slabs, axis=0)                          # (B*L, K*Cin)
    y = jnp.maximum(
        jnp.dot(cols.astype(jnp.bfloat16), w1_ref[...],
                preferred_element_type=jnp.float32) + b_ref[0:1, :], 0.0)   # (B*L, C)

    # ---- layers 2 & 3: im2col slices read from a zero-haloed VMEM scratch ---
    xpad_ref[...] = jnp.zeros_like(xpad_ref)   # halo rows stay zero for both layers
    for layer in range(2):                     # 0 -> conv2, 1 -> conv3 (w/b pre-scaled by 1/3)
        for bi in range(B):
            xpad_ref[bi, pad:pad + L, :] = y[bi * L:(bi + 1) * L, :]
        slabs = [jnp.concatenate([xpad_ref[bi, k:k + L, :] for k in range(K)], axis=-1)
                 for bi in range(B)]
        cols = jnp.concatenate(slabs, axis=0)                      # (B*L, K*C)
        y = jnp.maximum(
            jnp.dot(cols.astype(jnp.bfloat16), w23_ref[layer],
                    preferred_element_type=jnp.float32)
            + b_ref[layer + 1:layer + 2, :], 0.0)                  # (B*L, C)

    # ---- AvgPool1d(3): 1/3 already folded into layer 3 -> plain row sums ----
    # Assemble a lane-dense (B, Lp*C) output: one unmasked 128-lane row/sample.
    out_rows = []
    for bi in range(B):
        yb = y[bi * L:bi * L + 3 * Lp, :]                          # (3*Lp, C)
        pieces = [yb[3 * j:3 * j + 1, :]
                  + yb[3 * j + 1:3 * j + 2, :]
                  + yb[3 * j + 2:3 * j + 3, :] for j in range(Lp)]  # Lp x (1, C)
        out_rows.append(jnp.concatenate(pieces, axis=-1))          # (1, Lp*C)
    o_ref[...] = jnp.concatenate(out_rows, axis=0)                 # (B, Lp*C)


def gaze_encoder(x, params):
    """x: (B, L, Cin) float32  ->  (B, L // 3, dim_feat) float32 (eval mode)."""
    B, L, Cin = x.shape
    KCin, C = params["w1"].shape
    K = KCin // Cin
    pad = (K - 1) // 2
    Lp = L // 3
    third = jnp.float32(1.0 / 3.0)

    # Operand packing + pool-scale folding (once, outside the kernel).
    # Fold the 1/3 AvgPool scale into layer 3 in f32, THEN cast to bf16.
    w1 = params["w1"].astype(jnp.bfloat16)                                    # (K*Cin, C)
    w23 = jnp.stack([params["w2"], params["w3"] * third], axis=0).astype(jnp.bfloat16)  # (2, K*C, C)
    b = jnp.stack([params["b1"], params["b2"], params["b3"] * third], axis=0)  # (3, C) f32

    kernel = functools.partial(_gaze_encoder_kernel, L=L, K=K, C=C)
    vmem = lambda: pl.BlockSpec(memory_space=pltpu.MemorySpace.VMEM)

    out = pl.pallas_call(
        kernel,
        out_shape=jax.ShapeDtypeStruct((B, Lp * C), jnp.float32),
        in_specs=[vmem(), vmem(), vmem(), vmem()],
        out_specs=vmem(),
        scratch_shapes=[pltpu.VMEM((B, L + 2 * pad, C), jnp.float32)],
    )(x, w1, w23, b)
    return out.reshape(B, Lp, C)        # free metadata reshape outside the kernel


# ----------------------------------------------------------------------------
# Parameters (im2col weight layout).
# PyTorch Conv1d weight is (Cout, Cin, K); the layout used here is
#   w_im2col = torch_w.permute(2, 1, 0).reshape(K * Cin, Cout)   (kept in f32)
# ----------------------------------------------------------------------------
def init_params(key, *, input_dim=3, dim_feat=32, kernel_size=9):
    kw1, kw2, kw3, kb1, kb2, kb3 = jax.random.split(key, 6)

    def conv_w(k, cin, cout):
        w = jax.random.normal(k, (kernel_size, cin, cout), jnp.float32)
        w = w * (1.0 / math.sqrt(kernel_size * cin))
        return w.reshape(kernel_size * cin, cout)

    def bias(k, cout):
        return 0.1 * jax.random.normal(k, (cout,), jnp.float32)

    return {
        "w1": conv_w(kw1, input_dim, dim_feat), "b1": bias(kb1, dim_feat),
        "w2": conv_w(kw2, dim_feat, dim_feat), "b2": bias(kb2, dim_feat),
        "w3": conv_w(kw3, dim_feat, dim_feat), "b3": bias(kb3, dim_feat),
    }


# ----------------------------------------------------------------------------
# Plain-JAX reference (f32 activations, mirroring the kernel's bf16 weight
# rounding; AvgPool mean as in the PyTorch module).
# ----------------------------------------------------------------------------
def gaze_encoder_ref(x, params, *, kernel_size=9):
    B, L, Cin = x.shape
    C = params["b1"].shape[-1]

    def rt(w):  # bf16 round-trip, the rounding the kernel applies to MXU weights
        return w.astype(jnp.bfloat16).astype(jnp.float32)

    def conv(v, w_flat, b, cin):
        w = w_flat.reshape(kernel_size, cin, C)                    # (K, Cin, Cout) = 'WIO'
        y = jax.lax.conv_general_dilated(
            v, w, window_strides=(1,), padding="SAME",
            dimension_numbers=("NWC", "WIO", "NWC"))
        return jnp.maximum(y + b, 0.0)

    y = conv(x, rt(params["w1"]), params["b1"], Cin)
    y = conv(y, rt(params["w2"]), params["b2"], C)
    # Kernel folds the 1/3 pool scale into layer 3 before the bf16 cast;
    # mirror that rounding, then mean-pool exactly as the PyTorch module does.
    y = conv(y, rt(params["w3"] / 3.0) * 3.0, params["b3"], C)
    Lp = L // 3
    return y[:, :Lp * 3, :].reshape(B, Lp, 3, C).mean(axis=2)


if __name__ == "__main__":
    key = jax.random.PRNGKey(0)
    kp, kx = jax.random.split(key)

    B, L, Cin, C = 2, 12, 3, 32        # (batch, seq_len, input_dim) / dim_feat
    params = init_params(kp, input_dim=Cin, dim_feat=C, kernel_size=9)
    x = jax.random.normal(kx, (B, L, Cin), jnp.float32)   # PyTorch input shape (pre-permute)

    out = gaze_encoder(x, params)      # (B, L // 3, dim_feat)
    jax.block_until_ready(out)
    assert out.shape == (B, L // 3, C), out.shape

    ref = gaze_encoder_ref(x, params)
    max_err = float(jnp.max(jnp.abs(out - ref)))
    assert jnp.allclose(out, ref, rtol=5e-2, atol=5e-2), max_err

    print("KERNEL_OK")
</pallas_src>

<mosaic_0001>
module attributes {stable_mosaic.version = 11 : i64} {
  func.func @_gaze_encoder_kernel(%arg0: memref<2x12x3xf32, #tpu.memory_space<vmem>>, %arg1: memref<27x32xbf16, #tpu.memory_space<vmem>>, %arg2: memref<2x288x32xbf16, #tpu.memory_space<vmem>>, %arg3: memref<3x32xf32, #tpu.memory_space<vmem>>, %arg4: memref<2x128xf32, #tpu.memory_space<vmem>>, %arg5: memref<2x20x32xf32, #tpu.memory_space<vmem>>) attributes {dimension_semantics = [], scalar_prefetch = 0 : i64, scratch_operands = 1 : i64, tpu.core_type = #tpu.core_type<tc>} {
    %cst = arith.constant 0.000000e+00 : f32
    %0 = vector.broadcast %cst : f32 to vector<4x3xf32>
    %c0 = arith.constant 0 : index
    %c0_0 = arith.constant 0 : index
    %c0_1 = arith.constant 0 : index
    %1 = vector.load %arg0[%c0, %c0_0, %c0_1] : memref<2x12x3xf32, #tpu.memory_space<vmem>>, vector<1x12x3xf32>
    %2 = vector.shape_cast %1 : vector<1x12x3xf32> to vector<12x3xf32>
    %3 = tpu.concatenate %0, %2, %0 in 0 : vector<4x3xf32>, vector<12x3xf32>, vector<4x3xf32> -> vector<20x3xf32>
    %4 = vector.extract_strided_slice %3 {offsets = [0, 0], sizes = [12, 3], strides = [1, 1]} : vector<20x3xf32> to vector<12x3xf32>
    %5 = vector.extract_strided_slice %3 {offsets = [1, 0], sizes = [12, 3], strides = [1, 1]} : vector<20x3xf32> to vector<12x3xf32>
    %6 = vector.extract_strided_slice %3 {offsets = [2, 0], sizes = [12, 3], strides = [1, 1]} : vector<20x3xf32> to vector<12x3xf32>
    %7 = vector.extract_strided_slice %3 {offsets = [3, 0], sizes = [12, 3], strides = [1, 1]} : vector<20x3xf32> to vector<12x3xf32>
    %8 = vector.extract_strided_slice %3 {offsets = [4, 0], sizes = [12, 3], strides = [1, 1]} : vector<20x3xf32> to vector<12x3xf32>
    %9 = vector.extract_strided_slice %3 {offsets = [5, 0], sizes = [12, 3], strides = [1, 1]} : vector<20x3xf32> to vector<12x3xf32>
    %10 = vector.extract_strided_slice %3 {offsets = [6, 0], sizes = [12, 3], strides = [1, 1]} : vector<20x3xf32> to vector<12x3xf32>
    %11 = vector.extract_strided_slice %3 {offsets = [7, 0], sizes = [12, 3], strides = [1, 1]} : vector<20x3xf32> to vector<12x3xf32>
    %12 = vector.extract_strided_slice %3 {offsets = [8, 0], sizes = [12, 3], strides = [1, 1]} : vector<20x3xf32> to vector<12x3xf32>
    %13 = tpu.concatenate %4, %5, %6, %7, %8, %9, %10, %11, %12 in 1 : vector<12x3xf32>, vector<12x3xf32>, vector<12x3xf32>, vector<12x3xf32>, vector<12x3xf32>, vector<12x3xf32>, vector<12x3xf32>, vector<12x3xf32>, vector<12x3xf32> -> vector<12x27xf32>
    %c1 = arith.constant 1 : index
    %c0_2 = arith.constant 0 : index
    %c0_3 = arith.constant 0 : index
    %14 = vector.load %arg0[%c1, %c0_2, %c0_3] : memref<2x12x3xf32, #tpu.memory_space<vmem>>, vector<1x12x3xf32>
    %15 = vector.shape_cast %14 : vector<1x12x3xf32> to vector<12x3xf32>
    %16 = tpu.concatenate %0, %15, %0 in 0 : vector<4x3xf32>, vector<12x3xf32>, vector<4x3xf32> -> vector<20x3xf32>
    %17 = vector.extract_strided_slice %16 {offsets = [0, 0], sizes = [12, 3], strides = [1, 1]} : vector<20x3xf32> to vector<12x3xf32>
    %18 = vector.extract_strided_slice %16 {offsets = [1, 0], sizes = [12, 3], strides = [1, 1]} : vector<20x3xf32> to vector<12x3xf32>
    %19 = vector.extract_strided_slice %16 {offsets = [2, 0], sizes = [12, 3], strides = [1, 1]} : vector<20x3xf32> to vector<12x3xf32>
    %20 = vector.extract_strided_slice %16 {offsets = [3, 0], sizes = [12, 3], strides = [1, 1]} : vector<20x3xf32> to vector<12x3xf32>
    %21 = vector.extract_strided_slice %16 {offsets = [4, 0], sizes = [12, 3], strides = [1, 1]} : vector<20x3xf32> to vector<12x3xf32>
    %22 = vector.extract_strided_slice %16 {offsets = [5, 0], sizes = [12, 3], strides = [1, 1]} : vector<20x3xf32> to vector<12x3xf32>
    %23 = vector.extract_strided_slice %16 {offsets = [6, 0], sizes = [12, 3], strides = [1, 1]} : vector<20x3xf32> to vector<12x3xf32>
    %24 = vector.extract_strided_slice %16 {offsets = [7, 0], sizes = [12, 3], strides = [1, 1]} : vector<20x3xf32> to vector<12x3xf32>
    %25 = vector.extract_strided_slice %16 {offsets = [8, 0], sizes = [12, 3], strides = [1, 1]} : vector<20x3xf32> to vector<12x3xf32>
    %26 = tpu.concatenate %17, %18, %19, %20, %21, %22, %23, %24, %25 in 1 : vector<12x3xf32>, vector<12x3xf32>, vector<12x3xf32>, vector<12x3xf32>, vector<12x3xf32>, vector<12x3xf32>, vector<12x3xf32>, vector<12x3xf32>, vector<12x3xf32> -> vector<12x27xf32>
    %27 = tpu.concatenate %13, %26 in 0 : vector<12x27xf32>, vector<12x27xf32> -> vector<24x27xf32>
    %28 = arith.truncf %27 : vector<24x27xf32> to vector<24x27xbf16>
    %c0_4 = arith.constant 0 : index
    %c0_5 = arith.constant 0 : index
    %29 = vector.load %arg1[%c0_4, %c0_5] : memref<27x32xbf16, #tpu.memory_space<vmem>>, vector<27x32xbf16>
    %cst_6 = arith.constant dense<0.000000e+00> : vector<24x32xf32>
    %30 = tpu.matmul %28, %29, %cst_6 {dimension_numbers = #tpu.dot_dimension_numbers<[1], [0], [0], [1], [0, 0, 1, 1], [], []>} : vector<24x27xbf16>, vector<27x32xbf16>, vector<24x32xf32> -> vector<24x32xf32>
    %c0_7 = arith.constant 0 : index
    %c0_8 = arith.constant 0 : index
    %31 = vector.load %arg3[%c0_7, %c0_8] : memref<3x32xf32, #tpu.memory_space<vmem>>, vector<1x32xf32>
    %32 = vector.broadcast %31 : vector<1x32xf32> to vector<24x32xf32>
    %33 = arith.addf %30, %32 : vector<24x32xf32>
    %cst_9 = arith.constant 0.000000e+00 : f32
    %34 = vector.broadcast %cst_9 : f32 to vector<24x32xf32>
    %35 = arith.maximumf %33, %34 : vector<24x32xf32>
    %cst_10 = arith.constant 0.000000e+00 : f32
    %36 = vector.broadcast %cst_10 : f32 to vector<2x20x32xf32>
    %c0_11 = arith.constant 0 : index
    %c0_12 = arith.constant 0 : index
    %c0_13 = arith.constant 0 : index
    %37 = vector.load %arg5[%c0_11, %c0_12, %c0_13] : memref<2x20x32xf32, #tpu.memory_space<vmem>>, vector<2x20x32xf32>
    tpu.vector_store %arg5[%c0_11, %c0_12, %c0_13], %36 {strides = array<i32>} : memref<2x20x32xf32, #tpu.memory_space<vmem>>, vector<2x20x32xf32>,
    %38 = vector.extract_strided_slice %35 {offsets = [0, 0], sizes = [12, 32], strides = [1, 1]} : vector<24x32xf32> to vector<12x32xf32>
    %c0_14 = arith.constant 0 : index
    %c4 = arith.constant 4 : index
    %c0_15 = arith.constant 0 : index
    %39 = vector.load %arg5[%c0_14, %c4, %c0_15] : memref<2x20x32xf32, #tpu.memory_space<vmem>>, vector<1x12x32xf32>
    %40 = vector.shape_cast %39 : vector<1x12x32xf32> to vector<12x32xf32>
    %41 = vector.shape_cast %38 : vector<12x32xf32> to vector<1x12x32xf32>
    tpu.vector_store %arg5[%c0_14, %c4, %c0_15], %41 {strides = array<i32>} : memref<2x20x32xf32, #tpu.memory_space<vmem>>, vector<1x12x32xf32>,
    %42 = vector.extract_strided_slice %35 {offsets = [12, 0], sizes = [12, 32], strides = [1, 1]} : vector<24x32xf32> to vector<12x32xf32>
    %c1_16 = arith.constant 1 : index
    %c4_17 = arith.constant 4 : index
    %c0_18 = arith.constant 0 : index
    %43 = vector.load %arg5[%c1_16, %c4_17, %c0_18] : memref<2x20x32xf32, #tpu.memory_space<vmem>>, vector<1x12x32xf32>
    %44 = vector.shape_cast %43 : vector<1x12x32xf32> to vector<12x32xf32>
    %45 = vector.shape_cast %42 : vector<12x32xf32> to vector<1x12x32xf32>
    tpu.vector_store %arg5[%c1_16, %c4_17, %c0_18], %45 {strides = array<i32>} : memref<2x20x32xf32, #tpu.memory_space<vmem>>, vector<1x12x32xf32>,
    %c0_19 = arith.constant 0 : index
    %c0_20 = arith.constant 0 : index
    %c0_21 = arith.constant 0 : index
    %46 = vector.load %arg5[%c0_19, %c0_20, %c0_21] : memref<2x20x32xf32, #tpu.memory_space<vmem>>, vector<1x12x32xf32>
    %47 = vector.shape_cast %46 : vector<1x12x32xf32> to vector<12x32xf32>
    %c0_22 = arith.constant 0 : index
    %c1_23 = arith.constant 1 : index
    %c0_24 = arith.constant 0 : index
    %48 = vector.load %arg5[%c0_22, %c1_23, %c0_24] : memref<2x20x32xf32, #tpu.memory_space<vmem>>, vector<1x12x32xf32>
    %49 = vector.shape_cast %48 : vector<1x12x32xf32> to vector<12x32xf32>
    %c0_25 = arith.constant 0 : index
    %c2 = arith.constant 2 : index
    %c0_26 = arith.constant 0 : index
    %50 = vector.load %arg5[%c0_25, %c2, %c0_26] : memref<2x20x32xf32, #tpu.memory_space<vmem>>, vector<1x12x32xf32>
    %51 = vector.shape_cast %50 : vector<1x12x32xf32> to vector<12x32xf32>
    %c0_27 = arith.constant 0 : index
    %c3 = arith.constant 3 : index
    %c0_28 = arith.constant 0 : index
    %52 = vector.load %arg5[%c0_27, %c3, %c0_28] : memref<2x20x32xf32, #tpu.memory_space<vmem>>, vector<1x12x32xf32>
    %53 = vector.shape_cast %52 : vector<1x12x32xf32> to vector<12x32xf32>
    %c0_29 = arith.constant 0 : index
    %c4_30 = arith.constant 4 : index
    %c0_31 = arith.constant 0 : index
    %54 = vector.load %arg5[%c0_29, %c4_30, %c0_31] : memref<2x20x32xf32, #tpu.memory_space<vmem>>, vector<1x12x32xf32>
    %55 = vector.shape_cast %54 : vector<1x12x32xf32> to vector<12x32xf32>
    %c0_32 = arith.constant 0 : index
    %c5 = arith.constant 5 : index
    %c0_33 = arith.constant 0 : index
    %56 = vector.load %arg5[%c0_32, %c5, %c0_33] : memref<2x20x32xf32, #tpu.memory_space<vmem>>, vector<1x12x32xf32>
    %57 = vector.shape_cast %56 : vector<1x12x32xf32> to vector<12x32xf32>
    %c0_34 = arith.constant 0 : index
    %c6 = arith.constant 6 : index
    %c0_35 = arith.constant 0 : index
    %58 = vector.load %arg5[%c0_34, %c6, %c0_35] : memref<2x20x32xf32, #tpu.memory_space<vmem>>, vector<1x12x32xf32>
    %59 = vector.shape_cast %58 : vector<1x12x32xf32> to vector<12x32xf32>
    %c0_36 = arith.constant 0 : index
    %c7 = arith.constant 7 : index
    %c0_37 = arith.constant 0 : index
    %60 = vector.load %arg5[%c0_36, %c7, %c0_37] : memref<2x20x32xf32, #tpu.memory_space<vmem>>, vector<1x12x32xf32>
    %61 = vector.shape_cast %60 : vector<1x12x32xf32> to vector<12x32xf32>
    %c0_38 = arith.constant 0 : index
    %c8 = arith.constant 8 : index
    %c0_39 = arith.constant 0 : index
    %62 = vector.load %arg5[%c0_38, %c8, %c0_39] : memref<2x20x32xf32, #tpu.memory_space<vmem>>, vector<1x12x32xf32>
    %63 = vector.shape_cast %62 : vector<1x12x32xf32> to vector<12x32xf32>
    %64 = tpu.concatenate %47, %49, %51, %53, %55, %57, %59, %61, %63 in 1 : vector<12x32xf32>, vector<12x32xf32>, vector<12x32xf32>, vector<12x32xf32>, vector<12x32xf32>, vector<12x32xf32>, vector<12x32xf32>, vector<12x32xf32>, vector<12x32xf32> -> vector<12x288xf32>
    %c1_40 = arith.constant 1 : index
    %c0_41 = arith.constant 0 : index
    %c0_42 = arith.constant 0 : index
    %65 = vector.load %arg5[%c1_40, %c0_41, %c0_42] : memref<2x20x32xf32, #tpu.memory_space<vmem>>, vector<1x12x32xf32>
    %66 = vector.shape_cast %65 : vector<1x12x32xf32> to vector<12x32xf32>
    %c1_43 = arith.constant 1 : index
    %c1_44 = arith.constant 1 : index
    %c0_45 = arith.constant 0 : index
    %67 = vector.load %arg5[%c1_43, %c1_44, %c0_45] : memref<2x20x32xf32, #tpu.memory_space<vmem>>, vector<1x12x32xf32>
    %68 = vector.shape_cast %67 : vector<1x12x32xf32> to vector<12x32xf32>
    %c1_46 = arith.constant 1 : index
    %c2_47 = arith.constant 2 : index
    %c0_48 = arith.constant 0 : index
    %69 = vector.load %arg5[%c1_46, %c2_47, %c0_48] : memref<2x20x32xf32, #tpu.memory_space<vmem>>, vector<1x12x32xf32>
    %70 = vector.shape_cast %69 : vector<1x12x32xf32> to vector<12x32xf32>
    %c1_49 = arith.constant 1 : index
    %c3_50 = arith.constant 3 : index
    %c0_51 = arith.constant 0 : index
    %71 = vector.load %arg5[%c1_49, %c3_50, %c0_51] : memref<2x20x32xf32, #tpu.memory_space<vmem>>, vector<1x12x32xf32>
    %72 = vector.shape_cast %71 : vector<1x12x32xf32> to vector<12x32xf32>
    %c1_52 = arith.constant 1 : index
    %c4_53 = arith.constant 4 : index
    %c0_54 = arith.constant 0 : index
    %73 = vector.load %arg5[%c1_52, %c4_53, %c0_54] : memref<2x20x32xf32, #tpu.memory_space<vmem>>, vector<1x12x32xf32>
    %74 = vector.shape_cast %73 : vector<1x12x32xf32> to vector<12x32xf32>
    %c1_55 = arith.constant 1 : index
    %c5_56 = arith.constant 5 : index
    %c0_57 = arith.constant 0 : index
    %75 = vector.load %arg5[%c1_55, %c5_56, %c0_57] : memref<2x20x32xf32, #tpu.memory_space<vmem>>, vector<1x12x32xf32>
    %76 = vector.shape_cast %75 : vector<1x12x32xf32> to vector<12x32xf32>
    %c1_58 = arith.constant 1 : index
    %c6_59 = arith.constant 6 : index
    %c0_60 = arith.constant 0 : index
    %77 = vector.load %arg5[%c1_58, %c6_59, %c0_60] : memref<2x20x32xf32, #tpu.memory_space<vmem>>, vector<1x12x32xf32>
    %78 = vector.shape_cast %77 : vector<1x12x32xf32> to vector<12x32xf32>
    %c1_61 = arith.constant 1 : index
    %c7_62 = arith.constant 7 : index
    %c0_63 = arith.constant 0 : index
    %79 = vector.load %arg5[%c1_61, %c7_62, %c0_63] : memref<2x20x32xf32, #tpu.memory_space<vmem>>, vector<1x12x32xf32>
    %80 = vector.shape_cast %79 : vector<1x12x32xf32> to vector<12x32xf32>
    %c1_64 = arith.constant 1 : index
    %c8_65 = arith.constant 8 : index
    %c0_66 = arith.constant 0 : index
    %81 = vector.load %arg5[%c1_64, %c8_65, %c0_66] : memref<2x20x32xf32, #tpu.memory_space<vmem>>, vector<1x12x32xf32>
    %82 = vector.shape_cast %81 : vector<1x12x32xf32> to vector<12x32xf32>
    %83 = tpu.concatenate %66, %68, %70, %72, %74, %76, %78, %80, %82 in 1 : vector<12x32xf32>, vector<12x32xf32>, vector<12x32xf32>, vector<12x32xf32>, vector<12x32xf32>, vector<12x32xf32>, vector<12x32xf32>, vector<12x32xf32>, vector<12x32xf32> -> vector<12x288xf32>
    %84 = tpu.concatenate %64, %83 in 0 : vector<12x288xf32>, vector<12x288xf32> -> vector<24x288xf32>
    %85 = arith.truncf %84 : vector<24x288xf32> to vector<24x288xbf16>
    %c0_67 = arith.constant 0 : index
    %c0_68 = arith.constant 0 : index
    %c0_69 = arith.constant 0 : index
    %86 = vector.load %arg2[%c0_67, %c0_68, %c0_69] : memref<2x288x32xbf16, #tpu.memory_space<vmem>>, vector<1x288x32xbf16>
    %87 = vector.shape_cast %86 : vector<1x288x32xbf16> to vector<288x32xbf16>
    %cst_70 = arith.constant dense<0.000000e+00> : vector<24x32xf32>
    %88 = tpu.matmul %85, %87, %cst_70 {dimension_numbers = #tpu.dot_dimension_numbers<[1], [0], [0], [1], [0, 0, 1, 1], [], []>} : vector<24x288xbf16>, vector<288x32xbf16>, vector<24x32xf32> -> vector<24x32xf32>
    %c1_71 = arith.constant 1 : index
    %c0_72 = arith.constant 0 : index
    %89 = vector.load %arg3[%c1_71, %c0_72] : memref<3x32xf32, #tpu.memory_space<vmem>>, vector<1x32xf32>
    %90 = vector.broadcast %89 : vector<1x32xf32> to vector<24x32xf32>
    %91 = arith.addf %88, %90 : vector<24x32xf32>
    %cst_73 = arith.constant 0.000000e+00 : f32
    %92 = vector.broadcast %cst_73 : f32 to vector<24x32xf32>
    %93 = arith.maximumf %91, %92 : vector<24x32xf32>
    %94 = vector.extract_strided_slice %93 {offsets = [0, 0], sizes = [12, 32], strides = [1, 1]} : vector<24x32xf32> to vector<12x32xf32>
    %c0_74 = arith.constant 0 : index
    %c4_75 = arith.constant 4 : index
    %c0_76 = arith.constant 0 : index
    %95 = vector.load %arg5[%c0_74, %c4_75, %c0_76] : memref<2x20x32xf32, #tpu.memory_space<vmem>>, vector<1x12x32xf32>
    %96 = vector.shape_cast %95 : vector<1x12x32xf32> to vector<12x32xf32>
    %97 = vector.shape_cast %94 : vector<12x32xf32> to vector<1x12x32xf32>
    tpu.vector_store %arg5[%c0_74, %c4_75, %c0_76], %97 {strides = array<i32>} : memref<2x20x32xf32, #tpu.memory_space<vmem>>, vector<1x12x32xf32>,
    %98 = vector.extract_strided_slice %93 {offsets = [12, 0], sizes = [12, 32], strides = [1, 1]} : vector<24x32xf32> to vector<12x32xf32>
    %c1_77 = arith.constant 1 : index
    %c4_78 = arith.constant 4 : index
    %c0_79 = arith.constant 0 : index
    %99 = vector.load %arg5[%c1_77, %c4_78, %c0_79] : memref<2x20x32xf32, #tpu.memory_space<vmem>>, vector<1x12x32xf32>
    %100 = vector.shape_cast %99 : vector<1x12x32xf32> to vector<12x32xf32>
    %101 = vector.shape_cast %98 : vector<12x32xf32> to vector<1x12x32xf32>
    tpu.vector_store %arg5[%c1_77, %c4_78, %c0_79], %101 {strides = array<i32>} : memref<2x20x32xf32, #tpu.memory_space<vmem>>, vector<1x12x32xf32>,
    %c0_80 = arith.constant 0 : index
    %c0_81 = arith.constant 0 : index
    %c0_82 = arith.constant 0 : index
    %102 = vector.load %arg5[%c0_80, %c0_81, %c0_82] : memref<2x20x32xf32, #tpu.memory_space<vmem>>, vector<1x12x32xf32>
    %103 = vector.shape_cast %102 : vector<1x12x32xf32> to vector<12x32xf32>
    %c0_83 = arith.constant 0 : index
    %c1_84 = arith.constant 1 : index
    %c0_85 = arith.constant 0 : index
    %104 = vector.load %arg5[%c0_83, %c1_84, %c0_85] : memref<2x20x32xf32, #tpu.memory_space<vmem>>, vector<1x12x32xf32>
    %105 = vector.shape_cast %104 : vector<1x12x32xf32> to vector<12x32xf32>
    %c0_86 = arith.constant 0 : index
    %c2_87 = arith.constant 2 : index
    %c0_88 = arith.constant 0 : index
    %106 = vector.load %arg5[%c0_86, %c2_87, %c0_88] : memref<2x20x32xf32, #tpu.memory_space<vmem>>, vector<1x12x32xf32>
    %107 = vector.shape_cast %106 : vector<1x12x32xf32> to vector<12x32xf32>
    %c0_89 = arith.constant 0 : index
    %c3_90 = arith.constant 3 : index
    %c0_91 = arith.constant 0 : index
    %108 = vector.load %arg5[%c0_89, %c3_90, %c0_91] : memref<2x20x32xf32, #tpu.memory_space<vmem>>, vector<1x12x32xf32>
    %109 = vector.shape_cast %108 : vector<1x12x32xf32> to vector<12x32xf32>
    %c0_92 = arith.constant 0 : index
    %c4_93 = arith.constant 4 : index
    %c0_94 = arith.constant 0 : index
    %110 = vector.load %arg5[%c0_92, %c4_93, %c0_94] : memref<2x20x32xf32, #tpu.memory_space<vmem>>, vector<1x12x32xf32>
    %111 = vector.shape_cast %110 : vector<1x12x32xf32> to vector<12x32xf32>
    %c0_95 = arith.constant 0 : index
    %c5_96 = arith.constant 5 : index
    %c0_97 = arith.constant 0 : index
    %112 = vector.load %arg5[%c0_95, %c5_96, %c0_97] : memref<2x20x32xf32, #tpu.memory_space<vmem>>, vector<1x12x32xf32>
    %113 = vector.shape_cast %112 : vector<1x12x32xf32> to vector<12x32xf32>
    %c0_98 = arith.constant 0 : index
    %c6_99 = arith.constant 6 : index
    %c0_100 = arith.constant 0 : index
    %114 = vector.load %arg5[%c0_98, %c6_99, %c0_100] : memref<2x20x32xf32, #tpu.memory_space<vmem>>, vector<1x12x32xf32>
    %115 = vector.shape_cast %114 : vector<1x12x32xf32> to vector<12x32xf32>
    %c0_101 = arith.constant 0 : index
    %c7_102 = arith.constant 7 : index
    %c0_103 = arith.constant 0 : index
    %116 = vector.load %arg5[%c0_101, %c7_102, %c0_103] : memref<2x20x32xf32, #tpu.memory_space<vmem>>, vector<1x12x32xf32>
    %117 = vector.shape_cast %116 : vector<1x12x32xf32> to vector<12x32xf32>
    %c0_104 = arith.constant 0 : index
    %c8_105 = arith.constant 8 : index
    %c0_106 = arith.constant 0 : index
    %118 = vector.load %arg5[%c0_104, %c8_105, %c0_106] : memref<2x20x32xf32, #tpu.memory_space<vmem>>, vector<1x12x32xf32>
    %119 = vector.shape_cast %118 : vector<1x12x32xf32> to vector<12x32xf32>
    %120 = tpu.concatenate %103, %105, %107, %109, %111, %113, %115, %117, %119 in 1 : vector<12x32xf32>, vector<12x32xf32>, vector<12x32xf32>, vector<12x32xf32>, vector<12x32xf32>, vector<12x32xf32>, vector<12x32xf32>, vector<12x32xf32>, vector<12x32xf32> -> vector<12x288xf32>
    %c1_107 = arith.constant 1 : index
    %c0_108 = arith.constant 0 : index
    %c0_109 = arith.constant 0 : index
    %121 = vector.load %arg5[%c1_107, %c0_108, %c0_109] : memref<2x20x32xf32, #tpu.memory_space<vmem>>, vector<1x12x32xf32>
    %122 = vector.shape_cast %121 : vector<1x12x32xf32> to vector<12x32xf32>
    %c1_110 = arith.constant 1 : index
    %c1_111 = arith.constant 1 : index
    %c0_112 = arith.constant 0 : index
    %123 = vector.load %arg5[%c1_110, %c1_111, %c0_112] : memref<2x20x32xf32, #tpu.memory_space<vmem>>, vector<1x12x32xf32>
    %124 = vector.shape_cast %123 : vector<1x12x32xf32> to vector<12x32xf32>
    %c1_113 = arith.constant 1 : index
    %c2_114 = arith.constant 2 : index
    %c0_115 = arith.constant 0 : index
    %125 = vector.load %arg5[%c1_113, %c2_114, %c0_115] : memref<2x20x32xf32, #tpu.memory_space<vmem>>, vector<1x12x32xf32>
    %126 = vector.shape_cast %125 : vector<1x12x32xf32> to vector<12x32xf32>
    %c1_116 = arith.constant 1 : index
    %c3_117 = arith.constant 3 : index
    %c0_118 = arith.constant 0 : index
    %127 = vector.load %arg5[%c1_116, %c3_117, %c0_118] : memref<2x20x32xf32, #tpu.memory_space<vmem>>, vector<1x12x32xf32>
    %128 = vector.shape_cast %127 : vector<1x12x32xf32> to vector<12x32xf32>
    %c1_119 = arith.constant 1 : index
    %c4_120 = arith.constant 4 : index
    %c0_121 = arith.constant 0 : index
    %129 = vector.load %arg5[%c1_119, %c4_120, %c0_121] : memref<2x20x32xf32, #tpu.memory_space<vmem>>, vector<1x12x32xf32>
    %130 = vector.shape_cast %129 : vector<1x12x32xf32> to vector<12x32xf32>
    %c1_122 = arith.constant 1 : index
    %c5_123 = arith.constant 5 : index
    %c0_124 = arith.constant 0 : index
    %131 = vector.load %arg5[%c1_122, %c5_123, %c0_124] : memref<2x20x32xf32, #tpu.memory_space<vmem>>, vector<1x12x32xf32>
    %132 = vector.shape_cast %131 : vector<1x12x32xf32> to vector<12x32xf32>
    %c1_125 = arith.constant 1 : index
    %c6_126 = arith.constant 6 : index
    %c0_127 = arith.constant 0 : index
    %133 = vector.load %arg5[%c1_125, %c6_126, %c0_127] : memref<2x20x32xf32, #tpu.memory_space<vmem>>, vector<1x12x32xf32>
    %134 = vector.shape_cast %133 : vector<1x12x32xf32> to vector<12x32xf32>
    %c1_128 = arith.constant 1 : index
    %c7_129 = arith.constant 7 : index
    %c0_130 = arith.constant 0 : index
    %135 = vector.load %arg5[%c1_128, %c7_129, %c0_130] : memref<2x20x32xf32, #tpu.memory_space<vmem>>, vector<1x12x32xf32>
    %136 = vector.shape_cast %135 : vector<1x12x32xf32> to vector<12x32xf32>
    %c1_131 = arith.constant 1 : index
    %c8_132 = arith.constant 8 : index
    %c0_133 = arith.constant 0 : index
    %137 = vector.load %arg5[%c1_131, %c8_132, %c0_133] : memref<2x20x32xf32, #tpu.memory_space<vmem>>, vector<1x12x32xf32>
    %138 = vector.shape_cast %137 : vector<1x12x32xf32> to vector<12x32xf32>
    %139 = tpu.concatenate %122, %124, %126, %128, %130, %132, %134, %136, %138 in 1 : vector<12x32xf32>, vector<12x32xf32>, vector<12x32xf32>, vector<12x32xf32>, vector<12x32xf32>, vector<12x32xf32>, vector<12x32xf32>, vector<12x32xf32>, vector<12x32xf32> -> vector<12x288xf32>
    %140 = tpu.concatenate %120, %139 in 0 : vector<12x288xf32>, vector<12x288xf32> -> vector<24x288xf32>
    %141 = arith.truncf %140 : vector<24x288xf32> to vector<24x288xbf16>
    %c1_134 = arith.constant 1 : index
    %c0_135 = arith.constant 0 : index
    %c0_136 = arith.constant 0 : index
    %142 = vector.load %arg2[%c1_134, %c0_135, %c0_136] : memref<2x288x32xbf16, #tpu.memory_space<vmem>>, vector<1x288x32xbf16>
    %143 = vector.shape_cast %142 : vector<1x288x32xbf16> to vector<288x32xbf16>
    %cst_137 = arith.constant dense<0.000000e+00> : vector<24x32xf32>
    %144 = tpu.matmul %141, %143, %cst_137 {dimension_numbers = #tpu.dot_dimension_numbers<[1], [0], [0], [1], [0, 0, 1, 1], [], []>} : vector<24x288xbf16>, vector<288x32xbf16>, vector<24x32xf32> -> vector<24x32xf32>
    %c2_138 = arith.constant 2 : index
    %c0_139 = arith.constant 0 : index
    %145 = vector.load %arg3[%c2_138, %c0_139] : memref<3x32xf32, #tpu.memory_space<vmem>>, vector<1x32xf32>
    %146 = vector.broadcast %145 : vector<1x32xf32> to vector<24x32xf32>
    %147 = arith.addf %144, %146 : vector<24x32xf32>
    %cst_140 = arith.constant 0.000000e+00 : f32
    %148 = vector.broadcast %cst_140 : f32 to vector<24x32xf32>
    %149 = arith.maximumf %147, %148 : vector<24x32xf32>
    %150 = vector.extract_strided_slice %149 {offsets = [0, 0], sizes = [12, 32], strides = [1, 1]} : vector<24x32xf32> to vector<12x32xf32>
    %151 = vector.extract_strided_slice %150 {offsets = [0, 0], sizes = [1, 32], strides = [1, 1]} : vector<12x32xf32> to vector<1x32xf32>
    %152 = vector.extract_strided_slice %150 {offsets = [1, 0], sizes = [1, 32], strides = [1, 1]} : vector<12x32xf32> to vector<1x32xf32>
    %153 = arith.addf %151, %152 : vector<1x32xf32>
    %154 = vector.extract_strided_slice %150 {offsets = [2, 0], sizes = [1, 32], strides = [1, 1]} : vector<12x32xf32> to vector<1x32xf32>
    %155 = arith.addf %153, %154 : vector<1x32xf32>
    %156 = vector.extract_strided_slice %150 {offsets = [3, 0], sizes = [1, 32], strides = [1, 1]} : vector<12x32xf32> to vector<1x32xf32>
    %157 = vector.extract_strided_slice %150 {offsets = [4, 0], sizes = [1, 32], strides = [1, 1]} : vector<12x32xf32> to vector<1x32xf32>
    %158 = arith.addf %156, %157 : vector<1x32xf32>
    %159 = vector.extract_strided_slice %150 {offsets = [5, 0], sizes = [1, 32], strides = [1, 1]} : vector<12x32xf32> to vector<1x32xf32>
    %160 = arith.addf %158, %159 : vector<1x32xf32>
    %161 = vector.extract_strided_slice %150 {offsets = [6, 0], sizes = [1, 32], strides = [1, 1]} : vector<12x32xf32> to vector<1x32xf32>
    %162 = vector.extract_strided_slice %150 {offsets = [7, 0], sizes = [1, 32], strides = [1, 1]} : vector<12x32xf32> to vector<1x32xf32>
    %163 = arith.addf %161, %162 : vector<1x32xf32>
    %164 = vector.extract_strided_slice %150 {offsets = [8, 0], sizes = [1, 32], strides = [1, 1]} : vector<12x32xf32> to vector<1x32xf32>
    %165 = arith.addf %163, %164 : vector<1x32xf32>
    %166 = vector.extract_strided_slice %150 {offsets = [9, 0], sizes = [1, 32], strides = [1, 1]} : vector<12x32xf32> to vector<1x32xf32>
    %167 = vector.extract_strided_slice %150 {offsets = [10, 0], sizes = [1, 32], strides = [1, 1]} : vector<12x32xf32> to vector<1x32xf32>
    %168 = arith.addf %166, %167 : vector<1x32xf32>
    %169 = vector.extract_strided_slice %150 {offsets = [11, 0], sizes = [1, 32], strides = [1, 1]} : vector<12x32xf32> to vector<1x32xf32>
    %170 = arith.addf %168, %169 : vector<1x32xf32>
    %171 = tpu.concatenate %155, %160, %165, %170 in 1 : vector<1x32xf32>, vector<1x32xf32>, vector<1x32xf32>, vector<1x32xf32> -> vector<1x128xf32>
    %172 = vector.extract_strided_slice %149 {offsets = [12, 0], sizes = [12, 32], strides = [1, 1]} : vector<24x32xf32> to vector<12x32xf32>
    %173 = vector.extract_strided_slice %172 {offsets = [0, 0], sizes = [1, 32], strides = [1, 1]} : vector<12x32xf32> to vector<1x32xf32>
    %174 = vector.extract_strided_slice %172 {offsets = [1, 0], sizes = [1, 32], strides = [1, 1]} : vector<12x32xf32> to vector<1x32xf32>
    %175 = arith.addf %173, %174 : vector<1x32xf32>
    %176 = vector.extract_strided_slice %172 {offsets = [2, 0], sizes = [1, 32], strides = [1, 1]} : vector<12x32xf32> to vector<1x32xf32>
    %177 = arith.addf %175, %176 : vector<1x32xf32>
    %178 = vector.extract_strided_slice %172 {offsets = [3, 0], sizes = [1, 32], strides = [1, 1]} : vector<12x32xf32> to vector<1x32xf32>
    %179 = vector.extract_strided_slice %172 {offsets = [4, 0], sizes = [1, 32], strides = [1, 1]} : vector<12x32xf32> to vector<1x32xf32>
    %180 = arith.addf %178, %179 : vector<1x32xf32>
    %181 = vector.extract_strided_slice %172 {offsets = [5, 0], sizes = [1, 32], strides = [1, 1]} : vector<12x32xf32> to vector<1x32xf32>
    %182 = arith.addf %180, %181 : vector<1x32xf32>
    %183 = vector.extract_strided_slice %172 {offsets = [6, 0], sizes = [1, 32], strides = [1, 1]} : vector<12x32xf32> to vector<1x32xf32>
    %184 = vector.extract_strided_slice %172 {offsets = [7, 0], sizes = [1, 32], strides = [1, 1]} : vector<12x32xf32> to vector<1x32xf32>
    %185 = arith.addf %183, %184 : vector<1x32xf32>
    %186 = vector.extract_strided_slice %172 {offsets = [8, 0], sizes = [1, 32], strides = [1, 1]} : vector<12x32xf32> to vector<1x32xf32>
    %187 = arith.addf %185, %186 : vector<1x32xf32>
    %188 = vector.extract_strided_slice %172 {offsets = [9, 0], sizes = [1, 32], strides = [1, 1]} : vector<12x32xf32> to vector<1x32xf32>
    %189 = vector.extract_strided_slice %172 {offsets = [10, 0], sizes = [1, 32], strides = [1, 1]} : vector<12x32xf32> to vector<1x32xf32>
    %190 = arith.addf %188, %189 : vector<1x32xf32>
    %191 = vector.extract_strided_slice %172 {offsets = [11, 0], sizes = [1, 32], strides = [1, 1]} : vector<12x32xf32> to vector<1x32xf32>
    %192 = arith.addf %190, %191 : vector<1x32xf32>
    %193 = tpu.concatenate %177, %182, %187, %192 in 1 : vector<1x32xf32>, vector<1x32xf32>, vector<1x32xf32>, vector<1x32xf32> -> vector<1x128xf32>
    %194 = tpu.concatenate %171, %193 in 0 : vector<1x128xf32>, vector<1x128xf32> -> vector<2x128xf32>
    %c0_141 = arith.constant 0 : index
    %c0_142 = arith.constant 0 : index
    %195 = vector.load %arg4[%c0_141, %c0_142] : memref<2x128xf32, #tpu.memory_space<vmem>>, vector<2x128xf32>
    tpu.vector_store %arg4[%c0_141, %c0_142], %194 {strides = array<i32>} : memref<2x128xf32, #tpu.memory_space<vmem>>, vector<2x128xf32>,
    return
  }
}

</mosaic_0001>

<bundles_post_ra>
// kernel: tpu_custom_call.1
= control target key start
LH: loop header
LB: loop body
LE: loop exit
PB: predicated region body
PF: predicated region fallthrough
CT: control target
= control target key end

     0   :  { %vm23_vm0 = vcmask 1043456   ;;  %vm31_vm1 = vcmask 1046528   ;;  %vm41_vm2 = vcmask 1045504   ;;  %vm51_vm3 = vcmask 1044480   ;;  %s1754_s23 = smov 6   ;;  %s1755_s24 = smov 9   ;;  %s2156_s0 = inlined_call_operand.vmem [shape: f32[2,12,3], index: 0, kind: input, shape index: {}]   ;;  %s2157_s1 = inlined_call_operand.vmem [shape: bf16[27,32], index: 1, kind: input, shape index: {}]   ;;  %s2158_s2 = inlined_call_operand.vmem [shape: bf16[2,288,32], index: 2, kind: input, shape index: {}]   ;;  %s2159_s3 = inlined_call_operand.vmem [shape: f32[3,32], index: 3, kind: input, shape index: {}]   ;;  %s2160_s4 = inlined_call_operand.hbm [shape: f32[2,128], index: 4, kind: output, shape index: {}]  }
   0x1   :  { %v1306_v0 = vld [vmem:[%s2156_s0 + $0x10] sm:$0xff]  ;;  %v1307_v1 = vld [vmem:[%s2156_s0 + $0x18] sm:$0xf]  ;;  %v19_v4 = vld [vmem:[%s2156_s0] sm:$0xff]  ;;  %vm71_vm4 = vcmask 1042432   ;;  %v1753_v35 = vmov 0.0  }
   0x2   :  { %v142_v2 = vrot.slane %v1306_v0, 4  ;;  %v143_v3 = vrot.slane %v1307_v1, 4  ;;  %v20_v5 = vld [vmem:[%s2156_s0 + $0x8] sm:$0xf]  ;;  %v24_v6 = vrot.slane %v19_v4, 4  ;;  %s1752_s0 = smov 3  }
   0x3   :  { %v25_v7 = vrot.slane %v20_v5, 4  ;;  %v75_v36 = vrot.slane %v1753_v35, 5  ;;  %v87_v42 = vrot.slane %v1753_v35, 6  ;;  %vm83_vm5 = vcmask 1041408   ;;  %s1756_s25 = smov 12   ;;  %s1757_s28 = smov 15  }
   0x4   :  { %v1804_v8 = vsel %vm23_vm0, %v142_v2, %v143_v3  ;;  %v1807_v9 = vsel %vm23_vm0, 0.0, %v142_v2  ;;  %v1815_v13 = vsel %vm23_vm0, 0.0, %v24_v6  ;;  %v99_v53 = vrot.slane %v1753_v35, 7  ;;  %v1692_v63 = vld [vmem:[%s2157_s1 + $0x8] sm:$0x3f]   ;;  %s1759_s29 = smov 18  }
   0x5   :  { %v149_v10 = vrot.slane %v1807_v9, 1  ;;  %v150_v11 = vrot.slane %v1804_v8, 1  ;;  %v1812_v12 = vsel %vm23_vm0, %v24_v6, %v25_v7  ;;  %v32_v14 = vrot.slane %v1815_v13, 1  ;;  %s1760_s6 = smov 21   ;;  %s1761_s7 = smov 24  }
   0x6   :  { %v33_v15 = vrot.slane %v1812_v12, 1  ;;  %v158_v16 = vrot.slane %v1807_v9, 2  ;;  %v159_v17 = vrot.slane %v1804_v8, 2  ;;  %v167_v19 = vrot.slane %v1807_v9, 3 }
   0x7   :  { %v151_v18 = vsel %vm31_vm1, %v149_v10, %v150_v11  ;;  %v168_v20 = vrot.slane %v1804_v8, 3  ;;  %v42_v21 = vrot.slane %v1815_v13, 2  ;;  %v43_v25 = vrot.slane %v1812_v12, 2 }
   0x8   :  { %v1497_v22 = vpack.i.bf16 %v150_v11, %v151_v18  ;;  %v34_v23 = vsel %vm31_vm1, %v32_v14, %v33_v15  ;;  %v160_v24 = vsel %vm41_vm2, %v158_v16, %v159_v17  ;;  %v176_v28 = vrot.slane %v1807_v9, 4 }
   0x9   :  { %v1507_v26 = vpack.i.bf16 %v34_v23, %v33_v15  ;;  %v169_v27 = vsel %vm51_vm3, %v167_v19, %v168_v20  ;;  %v1502_v29 = vpack.i.bf16 %v159_v17, %v160_v24  ;;  %v177_v31 = vrot.slane %v1804_v8, 4  ;;  %v1693_v19 = vld [vmem:[%s2157_s1] sm:$0xff]  }
   0xa   :  { %1498 = vrot.lane.b32.xlu0 %v1497_v22, %s1752_s0  ;;  %v1512_v30 = vpack.i.bf16 %v168_v20, %v169_v27  ;;  %v44_v32 = vsel %vm41_vm2, %v42_v21, %v43_v25  ;;  %v52_v33 = vrot.slane %v1815_v13, 3  ;;  %v53_v34 = vrot.slane %v1812_v12, 3 }
   0xb   :  { %1508 = vrot.lane.b32.xlu1 %v1507_v26, %s1752_s0  ;;  %v178_v37 = vsel %vm23_vm0, %v176_v28, %v177_v31  ;;  %v185_v38 = vrot.slane %v1807_v9, 5  ;;  %v186_v39 = vrot.slane %v1804_v8, 5  ;;  %v61_v40 = vrot.slane %v1815_v13, 4 }
   0xc   :  { %v62_v41 = vrot.slane %v1812_v12, 4  ;;  %v1517_v43 = vpack.i.bf16 %v44_v32, %v43_v25  ;;  %v1522_v44 = vpack.i.bf16 %v177_v31, %v178_v37  ;;  %v54_v45 = vsel %vm51_vm3, %v52_v33, %v53_v34 }
   0xd   :  { %v195_v46 = vrot.slane %v1807_v9, 6  ;;  %v196_v47 = vrot.slane %v1804_v8, 6  ;;  %v187_v48 = vsel %vm71_vm4, %v185_v38, %v186_v39  ;;  %v188_v49 = vsel %vm71_vm4, %v186_v39, %v75_v36 }
   0xe   :  { %1503 = vrot.lane.b32.xlu0 %v1502_v29, %s1754_s23  ;;  %v72_v50 = vrot.slane %v1815_v13, 5  ;;  %v1527_v51 = vpack.i.bf16 %v54_v45, %v53_v34  ;;  %v73_v52 = vrot.slane %v1812_v12, 5  ;;  %v1532_v54 = vpack.i.bf16 %v188_v49, %v187_v48 }
   0xf   :  { %1513 = vrot.lane.b32.xlu1 %v1512_v30, %s1755_s24  ;;  %v63_v55 = vsel %vm23_vm0, %v61_v40, %v62_v41  ;;  %v197_v56 = vsel %vm83_vm5, %v195_v46, %v196_v47  ;;  %v198_v57 = vsel %vm83_vm5, %v196_v47, %v87_v42  ;;  %v205_v58 = vrot.slane %v1807_v9, 7 }
  0x10   :  { %v206_v59 = vrot.slane %v1804_v8, 7  ;;  %vm95_vm6 = vcmask 1040384   ;;  %v1537_v60 = vpack.i.bf16 %v63_v55, %v62_v41  ;;  %v1542_v61 = vpack.i.bf16 %v198_v57, %v197_v56 }
  0x11   :  { %v84_v62 = vrot.slane %v1815_v13, 6  ;;  %v74_v0 = vsel %vm71_vm4, %v72_v50, %v73_v52  ;;  %v76_v1 = vsel %vm71_vm4, %v73_v52, %v75_v36  ;;  %v85_v2 = vrot.slane %v1812_v12, 6 }
  0x12   :  { %1518 = vrot.lane.b32.xlu0 %v1517_v43, %s1754_s23  ;;  %v207_v3 = vsel %vm95_vm6, %v205_v58, %v206_v59  ;;  %v208_v4 = vsel %vm95_vm6, %v206_v59, %v99_v53  ;;  %v96_v5 = vrot.slane %v1815_v13, 7  ;;  %v1758_v6 = vmov 65535  }
  0x13   :  { %1523 = vrot.lane.b32.xlu1 %v1522_v44, %s1756_s25  ;;  %v271_v7 = vsel %vm51_vm3, 4294967295, %v1758_v6  ;;  %v97_v10 = vrot.slane %v1812_v12, 7  ;;  %v1547_v14 = vpack.i.bf16 %v74_v0, %v76_v1  ;;  %v1552_v16 = vpack.i.bf16 %v208_v4, %v207_v3 }
  0x14   :  { %v272_v11 = vsel %vm41_vm2, %v271_v7, 0  ;;  %v86_v17 = vsel %vm83_vm5, %v84_v62, %v85_v2  ;;  %v88_v18 = vsel %vm83_vm5, %v85_v2, %v87_v42  ;;  %v1562_v21 = vpack.i.bf16 %v1753_v35, %v1804_v8 }
  0x15   :  { %v274_v15 = vand.u32 %v1692_v63, %v272_v11  ;;  %v1557_v20 = vpack.i.bf16 %v86_v17, %v88_v18  ;;  %v98_v22 = vsel %vm95_vm6, %v96_v5, %v97_v10  ;;  %v100_v23 = vsel %vm95_vm6, %v97_v10, %v99_v53 }
  0x16   :  { %1528 = vrot.lane.b32.xlu0 %v1527_v51, %s1755_s24  ;;  %v1567_v24 = vpack.i.bf16 %v98_v22, %v100_v23 }
  0x17   :  { %1533 = vrot.lane.b32.xlu1 %v1532_v54, %s1757_s28  ;;  %1459 = vmatprep.subr.bf16.mxu0 %v274_v15 }
  0x18   :  { %1460 = vmatpush3.bf16.msra.mxu0 %v274_v15 }
  0x19   :  { %1461 = vmatprep.subr.bf16.mxu0 %v1693_v19 }
  0x1a   :  { %1538 = vrot.lane.b32.xlu0 %v1537_v60, %s1756_s25 }
  0x1b   :  { %1543 = vrot.lane.b32.xlu1 %v1542_v61, %s1759_s29 }
  0x1c   :  { %1462 = vmatpush3.bf16.msra.mxu0 %v1693_v19 }
  0x1e   :  { %1548 = vrot.lane.b32.xlu0 %v1547_v14, %s1757_s28 }
  0x1f   :  { %1553 = vrot.lane.b32.xlu1 %v1552_v16, %s1760_s6 }
  0x22   :  { %1558 = vrot.lane.b32.xlu0 %v1557_v20, %s1759_s29 }
  0x23   :  { %1563 = vrot.lane.b32.xlu1 %v1562_v21, %s1761_s7 }
  0x26   :  { %1568 = vrot.lane.b32.xlu0 %v1567_v24, %s1760_s6 }
  0x27   :  { %107 = vrot.lane.b32.xlu1 %v1812_v12, %s1761_s7 }
  0x28   :  { %9 = vsyncpa [#allocation4], 0  ;;  %vm113_vm7 = vcmask 23552   ;;  %vm116_vm8 = vcmask 48128   ;;  %vm119_vm9 = vcmask 72704   ;;  %vm122_vm10 = vcmask 97280  }
  0x29   :  { %vm125_vm11 = vcmask 121856   ;;  %vm128_vm12 = vcmask 146432   ;;  %vm131_vm13 = vcmask 171008   ;;  %vm134_vm14 = vcmask 195584   ;;  %s1762_s6 = smov 64   ;;  %s1763_s7 = smov 32  }
  0x2a   :  { %vm264_vm15 = vcmask 220160   ;;  %vm327_vm1 = vcmask 261120   ;;  %vm330_vm2 = vcmask 257024   ;;  %vm338_vm3 = vcmask 261124   ;;  %s1764_s11 = smov 96  }
  0x2b   :  { %333 = vst.msk [vmem:[#allocation2 + $0x20] sm:$0xff] %vm327_vm1, %v1753_v35  ;;  %328 = vst.msk [vmem:[#allocation2] sm:$0xff] %vm327_vm1, %v1753_v35  ;;  %vm409_vm4 = vcmask 523264   ;;  %vm412_vm5 = vcmask 785408  }
  0x2c   :  { %329 = vst.msk [vmem:[#allocation2 + $0x8] sm:$0xff] %vm327_vm1, %v1753_v35  ;;  %332 = vst.msk [vmem:[#allocation2 + $0x18] sm:$0xff] %vm327_vm1, %v1753_v35 }
  0x2d   :  { %331 = vst.msk [vmem:[#allocation2 + $0x10] sm:$0xf] %vm330_vm2, %v1753_v35  ;;  %334 = vst.msk [vmem:[#allocation2 + $0x28] sm:$0xf] %vm330_vm2, %v1753_v35  ;;  %v1697_v35 = vld [vmem:[%s2158_s2 + $0x38] sm:$0xff]  }
  0x7c   :  { %v1499_v25 = vpop.permute.xlu0 %1498 }
  0x7d   :  { %v1509_v26 = vpop.permute.xlu1 %1508  ;;  %v1501_v31 = vunpack.i.h.bf16 %v1499_v25  ;;  %v1500_v32 = vunpack.i.l.bf16 %v1499_v25 }
  0x7e   :  { %v1511_v38 = vunpack.i.h.bf16 %v1509_v26  ;;  %v1510_v39 = vunpack.i.l.bf16 %v1509_v26 }
  0x7f   :  { %v219_v40 = vsel %vm113_vm7, %v1804_v8, %v1501_v31  ;;  %v218_v41 = vsel %vm113_vm7, %v1807_v9, %v1500_v32 }
  0x80   :  { %v1504_v27 = vpop.permute.xlu0 %1503  ;;  %v114_v8 = vsel %vm113_vm7, %v1815_v13, %v1511_v38  ;;  %v115_v9 = vsel %vm113_vm7, %v1812_v12, %v1510_v39 }
  0x81   :  { %v1514_v28 = vpop.permute.xlu1 %1513  ;;  %v1506_v34 = vunpack.i.h.bf16 %v1504_v27  ;;  %v1505_v36 = vunpack.i.l.bf16 %v1504_v27 }
  0x82   :  { %v1516_v42 = vunpack.i.h.bf16 %v1514_v28  ;;  %v1515_v43 = vunpack.i.l.bf16 %v1514_v28 }
  0x83   :  { %v220_v45 = vsel %vm116_vm8, %v218_v41, %v1505_v36  ;;  %v221_v46 = vsel %vm116_vm8, %v219_v40, %v1506_v34 }
  0x84   :  { %v1519_v29 = vpop.permute.xlu0 %1518  ;;  %v223_v52 = vsel %vm119_vm9, %v221_v46, %v1516_v42  ;;  %v222_v53 = vsel %vm119_vm9, %v220_v45, %v1515_v43 }
  0x85   :  { %v1524_v30 = vpop.permute.xlu1 %1523  ;;  %v1521_v48 = vunpack.i.h.bf16 %v1519_v29  ;;  %v1520_v49 = vunpack.i.l.bf16 %v1519_v29 }
  0x86   :  { %v1526_v50 = vunpack.i.h.bf16 %v1524_v30  ;;  %v1525_v51 = vunpack.i.l.bf16 %v1524_v30 }
  0x87   :  { %v117_v62 = vsel %vm116_vm8, %v114_v8, %v1521_v48  ;;  %v118_v13 = vsel %vm116_vm8, %v115_v9, %v1520_v49  ;;  %v1695_v48 = vld [vmem:[%s2158_s2 + $0x80] sm:$0xff]   ;;  %v1696_v49 = vld [vmem:[%s2158_s2 + $0x78] sm:$0xff]   ;;  %v1700_v8 = vld [vmem:[%s2158_s2 + $0x68] sm:$0xff]  }
  0x88   :  { %v1529_v33 = vpop.permute.xlu0 %1528  ;;  %v224_v12 = vsel %vm122_vm10, %v222_v53, %v1525_v51  ;;  %v225_v63 = vsel %vm122_vm10, %v223_v52, %v1526_v50  ;;  %v1698_v50 = vld [vmem:[%s2158_s2 + $0x70] sm:$0xff]   ;;  %1395 = vmatprep.subr.bf16.mxu1 %v1696_v49  ;;  %v1701_v9 = vld [vmem:[%s2158_s2 + $0x28] sm:$0xff]   ;;  %v1308_v52 = vld [vmem:[%s2159_s3] ss:$0 sm:$0xff] }
  0x89   :  { %v1534_v37 = vpop.permute.xlu1 %1533  ;;  %v1531_v57 = vunpack.i.h.bf16 %v1529_v33  ;;  %v1530_v58 = vunpack.i.l.bf16 %v1529_v33  ;;  %1396 = vmatpush3.bf16.msra.mxu1 %v1697_v35  ;;  %v1699_v51 = vld [vmem:[%s2158_s2 + $0x30] sm:$0xff]  }
  0x8a   :  { %v1536_v54 = vunpack.i.h.bf16 %v1534_v37  ;;  %v1535_v55 = vunpack.i.l.bf16 %v1534_v37  ;;  %1397 = vmatprep.subr.bf16.mxu1 %v1698_v50 }
  0x8b   :  { %v120_v11 = vsel %vm119_vm9, %v117_v62, %v1531_v57  ;;  %v121_v14 = vsel %vm119_vm9, %v118_v13, %v1530_v58  ;;  %v438_v13 = vld [vmem:[#allocation2 + $0x28] sm:$0xf] }
  0x8c   :  { %v1539_v44 = vpop.permute.xlu0 %1538  ;;  %v226_v4 = vsel %vm125_vm11, %v224_v12, %v1535_v55  ;;  %v227_v5 = vsel %vm125_vm11, %v225_v63, %v1536_v54  ;;  %v1702_v12 = vld [vmem:[%s2158_s2 + $0x60] sm:$0xff]  }
  0x8d   :  { %v1544_v47 = vpop.permute.xlu1 %1543  ;;  %v1541_v0 = vunpack.i.h.bf16 %v1539_v44  ;;  %v1540_v1 = vunpack.i.l.bf16 %v1539_v44  ;;  %1398 = vmatpush3.bf16.msra.mxu1 %v1699_v51  ;;  %v1703_v63 = vld [vmem:[%s2158_s2 + $0x20] sm:$0xff]  }
  0x8e   :  { %v1546_v59 = vunpack.i.h.bf16 %v1544_v47  ;;  %v1545_v60 = vunpack.i.l.bf16 %v1544_v47  ;;  %v1694_v47 = vld [vmem:[%s2158_s2 + $0x88] sm:$0xff]   ;;  %1399 = vmatprep.subr.bf16.mxu1 %v1700_v8 }
  0x8f   :  { %v123_v22 = vsel %vm122_vm10, %v120_v11, %v1541_v0  ;;  %v124_v23 = vsel %vm122_vm10, %v121_v14, %v1540_v1  ;;  %1467 = vmatprep.subr.bf16.mxu0 %v1694_v47 }
  0x90   :  { %v1549_v56 = vpop.permute.xlu0 %1548  ;;  %v228_v15 = vsel %vm128_vm12, %v226_v4, %v1545_v60  ;;  %v229_v16 = vsel %vm128_vm12, %v227_v5, %v1546_v59  ;;  %v1704_v4 = vld [vmem:[%s2158_s2 + $0x58] sm:$0xff]  }
  0x91   :  { %v1554_v61 = vpop.permute.xlu1 %1553  ;;  %v1551_v6 = vunpack.i.h.bf16 %v1549_v56  ;;  %v1550_v7 = vunpack.i.l.bf16 %v1549_v56  ;;  %1400 = vmatpush3.bf16.msra.mxu1 %v1701_v9  ;;  %v1705_v5 = vld [vmem:[%s2158_s2 + $0x18] sm:$0xff]  }
  0x92   :  { %v1556_v2 = vunpack.i.h.bf16 %v1554_v61  ;;  %v1555_v3 = vunpack.i.l.bf16 %v1554_v61  ;;  %1401 = vmatprep.subr.bf16.mxu1 %v1702_v12 }
  0x93   :  { %v126_v26 = vsel %vm125_vm11, %v123_v22, %v1551_v6  ;;  %v127_v27 = vsel %vm125_vm11, %v124_v23, %v1550_v7 }
  0x94   :  { %v1559_v10 = vpop.permute.xlu0 %1558  ;;  %v230_v24 = vsel %vm131_vm13, %v228_v15, %v1555_v3  ;;  %v231_v25 = vsel %vm131_vm13, %v229_v16, %v1556_v2  ;;  %v512_v2 = vrot.slane %v438_v13, 4  ;;  %v358_v3 = vld [vmem:[#allocation2 + $0x10] sm:$0xf] }
  0x95   :  { %v1564_v17 = vpop.permute.xlu1 %1563  ;;  %v1561_v18 = vunpack.i.h.bf16 %v1559_v10  ;;  %v1560_v19 = vunpack.i.l.bf16 %v1559_v10  ;;  %1402 = vmatpush3.bf16.msra.mxu1 %v1703_v63 }
  0x96   :  { %v1566_v20 = vunpack.i.h.bf16 %v1564_v17  ;;  %v1565_v21 = vunpack.i.l.bf16 %v1564_v17  ;;  %1403 = vmatprep.subr.bf16.mxu1 %v1704_v4 }
  0x97   :  { %v130_v37 = vsel %vm128_vm12, %v127_v27, %v1560_v19  ;;  %v129_v38 = vsel %vm128_vm12, %v126_v26, %v1561_v18 }
  0x98   :  { %v1569_v28 = vpop.permute.xlu0 %1568  ;;  %v233_v29 = vsel %vm134_vm14, %v231_v25, %v1566_v20  ;;  %v232_v30 = vsel %vm134_vm14, %v230_v24, %v1565_v21 }
  0x99   :  { %v1571_v31 = vunpack.i.h.bf16 %v1569_v28  ;;  %v1570_v32 = vunpack.i.l.bf16 %v1569_v28  ;;  %v108_v33 = vpop.permute.xlu1 %107  ;;  %v237_v34 = vrot.slane %v233_v29, 4  ;;  %v236_v36 = vrot.slane %v232_v30, 4  ;;  %1404 = vmatpush3.bf16.msra.mxu1 %v1705_v5  ;;  %v1706_v29 = vld [vmem:[%s2158_s2 + $0x50] sm:$0xff]  }
  0x9a   :  { %v1707_v30 = vld [vmem:[%s2158_s2 + $0x10] sm:$0xff]   ;;  %1405 = vmatprep.subr.bf16.mxu1 %v1706_v29 }
  0x9b   :  { %v133_v39 = vsel %vm131_vm13, %v130_v37, %v1570_v32  ;;  %v132_v40 = vsel %vm131_vm13, %v129_v38, %v1571_v31  ;;  %v238_v43 = vsel %vm23_vm0, %v236_v36, %v237_v34  ;;  %v1708_v32 = vld [vmem:[%s2158_s2 + $0x48] sm:$0xff]  }
  0x9c   :  { %v135_v41 = vsel %vm134_vm14, %v132_v40, %v108_v33  ;;  %v136_v42 = vsel %vm134_vm14, %v133_v39, %v1566_v20  ;;  %v243_v46 = vpack.c.bf16 %v238_v43, %v238_v43  ;;  %v1710_v40 = vld [vmem:[%s2158_s2 + $0x40] sm:$0xff]  }
  0x9d   :  { %v241_v44 = vsel %vm23_vm0, %v136_v42, %v236_v36  ;;  %1406 = vmatpush3.bf16.msra.mxu1 %v1707_v30  ;;  %v1709_v36 = vld [vmem:[%s2158_s2 + $0x8] sm:$0xff]  }
  0x9e   :  { %v242_v45 = vpack.c.bf16 %v241_v44, %v135_v41  ;;  %1407 = vmatprep.subr.bf16.mxu1 %v1708_v32  ;;  %v1711_v44 = vld [vmem:[%s2158_s2] sm:$0xff]  }
  0xa0   :  { %1463 = vmatprep.mubr.msk.bf16.mxu0 %vm264_vm15, %v242_v45 }
  0xa1   :  { %1464 = vmatmul.mubr.msk.bf16.vlgmr.msra.gmra.mxu0 %vm264_vm15, %v243_v46  ;;  %1408 = vmatpush3.bf16.msra.mxu1 %v1709_v36 }
  0xa2   :  { %1468 = vmatpush3.bf16.msra.mxu0 %v1694_v47  ;;  %1409 = vmatprep.subr.bf16.mxu1 %v1710_v40 }
  0xa3   :  { %1469 = vmatprep.subr.bf16.mxu0 %v1695_v48 }
  0xa5   :  { %1410 = vmatpush3.bf16.msra.mxu1 %v1711_v44 }
  0xa6   :  { %1470 = vmatpush3.bf16.msra.mxu0 %v1695_v48 }
 0x161   :  { %v1465_v53 = vpop.f32.mrf.mxu0 }
 0x162   :  { %v319_v54 = vadd.f32 %v1465_v53, %v1308_v52 }
 0x163   :  { %v310_v55 = vpop.f32.mrf.mxu0 }
 0x164   :  { %v326_v56 = vmax.f32 %v319_v54, 0.0  ;;  %v311_v57 = vadd.f32 %v1308_v52, %v310_v55 }
 0x165   :  { %v1466_v58 = vpop.f32.mrf.mxu0 }
 0x166   :  { %340 = vst.msk [vmem:[#allocation2 + $0x20] sm:$0xff] %vm327_vm1, %v326_v56  ;;  %v324_v59 = vmax.f32 %v311_v57, 0.0 }
 0x167   :  { %v313_v60 = vpop.f32.mrf.mxu0 }
 0x168   :  { %335 = vst.msk [vmem:[#allocation2 + $0x4] sm:$0xff] %vm327_vm1, %v324_v59  ;;  %v314_v61 = vadd.f32 %v1308_v52, %v313_v60 }
 0x16a   :  { %v325_v62 = vmax.f32 %v314_v61, 0.0 }
 0x16c   :  { %336 = vst.msk [vmem:[#allocation2 + $0xc] sm:$0xf] %vm330_vm2, %v325_v62 }
 0x16d   :  { %339 = vst.msk [vmem:[#allocation2 + $0x18] sm:$0xf0] %vm338_vm3, %v325_v62  ;;  %v437_v0 = vld [vmem:[#allocation2 + $0x20] sm:$0xff] }
 0x16e   :  { %v507_v1 = vrot.slane %v437_v0, 4  ;;  %v424_v46 = vld [vmem:[#allocation2 + $0x21] sm:$0xf]  ;;  %v432_v47 = vld [vmem:[#allocation2 + $0x25] sm:$0xf] }
 0x16f   :  { %v343_v34 = vld [vmem:[#allocation2 + $0x1] sm:$0xff]  ;;  %v1612_v49 = vpack.i.bf16 %v424_v46, %v432_v47 }
 0x170   :  { %v513_v11 = vsel %vm23_vm0, %v507_v1, %v512_v2  ;;  %v522_v17 = vsel %vm23_vm0, %v358_v3, %v507_v1  ;;  %v345_v43 = vld [vmem:[#allocation2 + $0x2] sm:$0xff] }
 0x171   :  { %v528_v22 = vpack.c.bf16 %v513_v11, %v513_v11  ;;  %v347_v35 = vld [vmem:[#allocation2 + $0x3] sm:$0xff] }
 0x172   :  { %v428_v51 = vld [vmem:[#allocation2 + $0x23] sm:$0xf]  ;;  %v436_v8 = vld [vmem:[#allocation2 + $0x27] sm:$0xf] }
 0x173   :  { %v357_v16 = vld [vmem:[#allocation2 + $0x8] sm:$0xff]  ;;  %v426_v9 = vld [vmem:[#allocation2 + $0x22] sm:$0xf]  ;;  %v1627_v53 = vpack.i.bf16 %v428_v51, %v436_v8 }
 0x174   :  { %v425_v6 = vld [vmem:[#allocation2 + $0x1a] sm:$0xff]  ;;  %v525_v19 = vpack.c.bf16 %v522_v17, %v357_v16  ;;  %v344_v23 = vld [vmem:[#allocation2 + $0x9] sm:$0xf]  ;;  %v352_v24 = vld [vmem:[#allocation2 + $0xd] sm:$0xf] }
 0x175   :  { %v433_v7 = vld [vmem:[#allocation2 + $0x1e] sm:$0xff]  ;;  %v346_v26 = vld [vmem:[#allocation2 + $0xa] sm:$0xf]  ;;  %v1582_v27 = vpack.i.bf16 %v344_v23, %v352_v24  ;;  %v354_v28 = vld [vmem:[#allocation2 + $0xe] sm:$0xf] }
 0x176   :  { %v423_v10 = vld [vmem:[#allocation2 + $0x19] sm:$0xff]  ;;  %v1577_v14 = vpack.i.bf16 %v425_v6, %v433_v7  ;;  %1471 = vmatprep.mubr.msk.bf16.mxu0 %vm327_vm1, %v525_v19  ;;  %v351_v31 = vld [vmem:[#allocation2 + $0x5] sm:$0xff]  ;;  %v1597_v33 = vpack.i.bf16 %v346_v26, %v354_v28  ;;  %v356_v39 = vld [vmem:[#allocation2 + $0xf] sm:$0xf] }
 0x177   :  { %v431_v15 = vld [vmem:[#allocation2 + $0x1d] sm:$0xff]  ;;  %1472 = vmatmul.mubr.msk.bf16.vlgmr.msra.gmra.mxu0 %vm327_vm1, %v528_v22  ;;  %v1592_v37 = vpack.i.bf16 %v343_v34, %v351_v31  ;;  %v348_v38 = vld [vmem:[#allocation2 + $0xb] sm:$0xf]  ;;  %v434_v52 = vld [vmem:[#allocation2 + $0x26] sm:$0xf] }
 0x178   :  { %v1572_v18 = vpack.i.bf16 %v423_v10, %v431_v15  ;;  %v427_v20 = vld [vmem:[#allocation2 + $0x1b] sm:$0xff]  ;;  %1578 = vrot.lane.b32.xlu1 %v1577_v14, %s1762_s6  ;;  %v353_v41 = vld [vmem:[#allocation2 + $0x6] sm:$0xff]  ;;  %v1607_v42 = vpack.i.bf16 %v348_v38, %v356_v39  ;;  %v1622_v54 = vpack.i.bf16 %v426_v9, %v434_v52 }
 0x179   :  { %v435_v21 = vld [vmem:[#allocation2 + $0x1f] sm:$0xff]  ;;  %v1602_v45 = vpack.i.bf16 %v345_v43, %v353_v41  ;;  %v355_v48 = vld [vmem:[#allocation2 + $0x7] sm:$0xff] }
 0x17a   :  { %1573 = vrot.lane.b32.xlu0 %v1572_v18, %s1763_s7  ;;  %v1587_v25 = vpack.i.bf16 %v427_v20, %v435_v21  ;;  %v1617_v50 = vpack.i.bf16 %v347_v35, %v355_v48  ;;  %v429_v12 = vld [vmem:[#allocation2 + $0x1c] sm:$0xff]  ;;  %v350_v20 = vld [vmem:[#allocation2 + $0xc] sm:$0xf]  ;;  %v342_v21 = vld [vmem:[#allocation2 + $0x8] sm:$0xf] }
 0x17b   :  { %v421_v63 = vld [vmem:[#allocation2 + $0x18] sm:$0xff] }
 0x17c   :  { %1588 = vrot.lane.b32.xlu1 %v1587_v25, %s1764_s11 }
 0x17e   :  { %1583 = vrot.lane.b32.xlu0 %v1582_v27, %s1763_s7 }
 0x180   :  { %1598 = vrot.lane.b32.xlu1 %v1597_v33, %s1762_s6  ;;  %v341_v33 = vld [vmem:[#allocation2] sm:$0xff] }
 0x182   :  { %1593 = vrot.lane.b32.xlu0 %v1592_v37, %s1763_s7  ;;  %v349_v37 = vld [vmem:[#allocation2 + $0x4] sm:$0xff] }
 0x184   :  { %1608 = vrot.lane.b32.xlu1 %v1607_v42, %s1764_s11 }
 0x186   :  { %1603 = vrot.lane.b32.xlu0 %v1602_v45, %s1762_s6 }
 0x188   :  { %1613 = vrot.lane.b32.xlu1 %v1612_v49, %s1763_s7 }
 0x18a   :  { %1618 = vrot.lane.b32.xlu0 %v1617_v50, %s1764_s11 }
 0x18c   :  { %1628 = vrot.lane.b32.xlu1 %v1627_v53, %s1764_s11 }
 0x18e   :  { %1623 = vrot.lane.b32.xlu0 %v1622_v54, %s1762_s6 }
 0x1ea   :  { %v1579_v55 = vpop.permute.xlu1 %1578 }
 0x1eb   :  { %v1581_v62 = vunpack.i.h.bf16 %v1579_v55  ;;  %v1580_v13 = vunpack.i.l.bf16 %v1579_v55  ;;  %v422_v55 = vld [vmem:[#allocation2 + $0x20] sm:$0xf] }
 0x1ec   :  { %v1574_v56 = vpop.permute.xlu0 %1573 }
 0x1ed   :  { %v1576_v59 = vunpack.i.h.bf16 %v1574_v56  ;;  %v1575_v60 = vunpack.i.l.bf16 %v1574_v56  ;;  %v430_v56 = vld [vmem:[#allocation2 + $0x24] sm:$0xf] }
 0x1ee   :  { %v1589_v57 = vpop.permute.xlu1 %1588 }
 0x1ef   :  { %v487_v1 = vsel %vm327_vm1, %v421_v63, %v1576_v59  ;;  %v493_v2 = vsel %vm327_vm1, %v429_v12, %v1575_v60  ;;  %v1591_v3 = vunpack.i.h.bf16 %v1589_v57  ;;  %v1590_v4 = vunpack.i.l.bf16 %v1589_v57 }
 0x1f0   :  { %v1584_v58 = vpop.permute.xlu0 %1583  ;;  %v489_v14 = vsel %vm409_vm4, %v487_v1, %v1581_v62  ;;  %v495_v18 = vsel %vm409_vm4, %v493_v2, %v1580_v13 }
 0x1f1   :  { %v1586_v5 = vunpack.i.h.bf16 %v1584_v58  ;;  %v1585_v6 = vunpack.i.l.bf16 %v1584_v58  ;;  %v491_v19 = vsel %vm412_vm5, %v489_v14, %v1591_v3  ;;  %v497_v24 = vsel %vm412_vm5, %v495_v18, %v1590_v4  ;;  %v1714_v14 = vld [vmem:[%s2158_s2 + $0x108] sm:$0xff]   ;;  %v1718_v18 = vld [vmem:[%s2158_s2 + $0xf8] sm:$0xff]  }
 0x1f2   :  { %v1599_v61 = vpop.permute.xlu1 %1598  ;;  %v505_v32 = vrot.slane %v491_v19, 4  ;;  %v506_v39 = vrot.slane %v497_v24, 4  ;;  %1427 = vmatprep.subr.bf16.mxu0 %v1714_v14  ;;  %v1719_v19 = vld [vmem:[%s2158_s2 + $0xb8] sm:$0xff]  }
 0x1f3   :  { %v1601_v7 = vunpack.i.h.bf16 %v1599_v61  ;;  %v1600_v10 = vunpack.i.l.bf16 %v1599_v61  ;;  %v408_v25 = vsel %vm327_vm1, %v342_v21, %v1586_v5  ;;  %v416_v26 = vsel %vm327_vm1, %v350_v20, %v1585_v6  ;;  %v1313_v21 = vld [vmem:[%s2159_s3 + $0x1] ss:$0 sm:$0xff] }
 0x1f4   :  { %v1594_v0 = vpop.permute.xlu0 %1593 }
 0x1f5   :  { %v1596_v22 = vunpack.i.h.bf16 %v1594_v0  ;;  %v1595_v23 = vunpack.i.l.bf16 %v1594_v0  ;;  %v411_v29 = vsel %vm409_vm4, %v408_v25, %v1601_v7  ;;  %v418_v31 = vsel %vm409_vm4, %v416_v26, %v1600_v10  ;;  %v1712_v10 = vld [vmem:[%s2158_s2 + $0x118] sm:$0xff]  }
 0x1f6   :  { %v1609_v11 = vpop.permute.xlu1 %1608  ;;  %1475 = vmatprep.subr.bf16.mxu1 %v1712_v10 }
 0x1f7   :  { %v1611_v15 = vunpack.i.h.bf16 %v1609_v11  ;;  %v1610_v16 = vunpack.i.l.bf16 %v1609_v11  ;;  %v407_v40 = vsel %vm327_vm1, %v341_v33, %v1596_v22  ;;  %v415_v43 = vsel %vm327_vm1, %v349_v37, %v1595_v23  ;;  %v1713_v11 = vld [vmem:[%s2158_s2 + $0x110] sm:$0xff]  }
 0x1f8   :  { %v1604_v17 = vpop.permute.xlu0 %1603 }
 0x1f9   :  { %v1606_v27 = vunpack.i.h.bf16 %v1604_v17  ;;  %v1605_v28 = vunpack.i.l.bf16 %v1604_v17  ;;  %v414_v34 = vsel %vm412_vm5, %v411_v29, %v1611_v15  ;;  %v420_v38 = vsel %vm412_vm5, %v418_v31, %v1610_v16  ;;  %v1715_v15 = vld [vmem:[%s2158_s2 + $0xc8] sm:$0xff]   ;;  %v1716_v16 = vld [vmem:[%s2158_s2 + $0x100] sm:$0xff]  }
 0x1fa   :  { %v1614_v30 = vpop.permute.xlu1 %1613  ;;  %v521_v35 = vsel %vm23_vm0, %v420_v38, %v506_v39  ;;  %v520_v51 = vsel %vm23_vm0, %v414_v34, %v505_v32  ;;  %1428 = vmatpush3.bf16.msra.mxu0 %v1715_v15  ;;  %v1717_v17 = vld [vmem:[%s2158_s2 + $0xc0] sm:$0xff]  }
 0x1fb   :  { %v410_v44 = vsel %vm409_vm4, %v407_v40, %v1606_v27  ;;  %v1616_v45 = vunpack.i.h.bf16 %v1614_v30  ;;  %v1615_v46 = vunpack.i.l.bf16 %v1614_v30  ;;  %v417_v47 = vsel %vm409_vm4, %v415_v43, %v1605_v28  ;;  %1429 = vmatprep.subr.bf16.mxu0 %v1716_v16  ;;  %v1721_v43 = vld [vmem:[%s2158_s2 + $0xb0] sm:$0xff]   ;;  %v1727_v16 = vld [vmem:[%s2158_s2 + $0x98] sm:$0xff]  }
 0x1fc   :  { %v1619_v36 = vpop.permute.xlu0 %1618 }
 0x1fd   :  { %v1621_v41 = vunpack.i.h.bf16 %v1619_v36  ;;  %v1620_v42 = vunpack.i.l.bf16 %v1619_v36  ;;  %v488_v59 = vsel %vm327_vm1, %v422_v55, %v1616_v45  ;;  %v494_v60 = vsel %vm327_vm1, %v430_v56, %v1615_v46  ;;  %v1722_v45 = vld [vmem:[%s2158_s2 + $0xe8] sm:$0xff]   ;;  %v804_v55 = vld [vmem:[#allocation2 + $0x10] sm:$0xf] }
 0x1fe   :  { %v1629_v48 = vpop.permute.xlu1 %1628  ;;  %1430 = vmatpush3.bf16.msra.mxu0 %v1717_v17  ;;  %v1723_v46 = vld [vmem:[%s2158_s2 + $0xa8] sm:$0xff]  }
 0x1ff   :  { %v419_v49 = vsel %vm412_vm5, %v417_v47, %v1620_v42  ;;  %v413_v50 = vsel %vm412_vm5, %v410_v44, %v1621_v41  ;;  %v1631_v8 = vunpack.i.h.bf16 %v1629_v48  ;;  %v1630_v9 = vunpack.i.l.bf16 %v1629_v48  ;;  %1431 = vmatprep.subr.bf16.mxu0 %v1718_v18  ;;  %v1720_v42 = vld [vmem:[%s2158_s2 + $0xf0] sm:$0xff]   ;;  %v882_v47 = vld [vmem:[#allocation2 + $0x28] sm:$0xf] }
 0x200   :  { %v1624_v52 = vpop.permute.xlu0 %1623  ;;  %v524_v53 = vpack.c.bf16 %v521_v35, %v419_v49  ;;  %v523_v54 = vpack.c.bf16 %v520_v51, %v413_v50 }
 0x201   :  { %v1626_v57 = vunpack.i.h.bf16 %v1624_v52  ;;  %v1625_v58 = vunpack.i.l.bf16 %v1624_v52 }
 0x202   :  { %716 = vmatprep.mubr.bf16.mxu1 %v524_v53  ;;  %1432 = vmatpush3.bf16.msra.mxu0 %v1719_v19  ;;  %v1728_v19 = vld [vmem:[%s2158_s2 + $0xd0] sm:$0xff]  }
 0x203   :  { %v490_v61 = vsel %vm409_vm4, %v488_v59, %v1626_v57  ;;  %v496_v62 = vsel %vm409_vm4, %v494_v60, %v1625_v58  ;;  %717 = vmatmul.mubr.bf16.vlgmr.msra.gmra.mxu1 %v523_v54  ;;  %1433 = vmatprep.subr.bf16.mxu0 %v1720_v42  ;;  %v956_v54 = vrot.slane %v882_v47, 4 }
 0x204   :  { %v492_v13 = vsel %vm412_vm5, %v490_v61, %v1631_v8  ;;  %v498_v12 = vsel %vm412_vm5, %v496_v62, %v1630_v9  ;;  %1476 = vmatpush3.bf16.msra.mxu1 %v1712_v10 }
 0x205   :  { %v510_v63 = vrot.slane %v498_v12, 4  ;;  %v508_v0 = vrot.slane %v492_v13, 4  ;;  %1477 = vmatprep.subr.bf16.mxu1 %v1713_v11 }
 0x206   :  { %1434 = vmatpush3.bf16.msra.mxu0 %v1721_v43 }
 0x207   :  { %v511_v1 = vsel %vm23_vm0, %v506_v39, %v510_v63  ;;  %v509_v2 = vsel %vm23_vm0, %v505_v32, %v508_v0  ;;  %1435 = vmatprep.subr.bf16.mxu0 %v1722_v45 }
 0x208   :  { %v527_v3 = vpack.c.bf16 %v511_v1, %v511_v1  ;;  %v526_v4 = vpack.c.bf16 %v509_v2, %v509_v2  ;;  %1478 = vmatpush3.bf16.msra.mxu1 %v1713_v11 }
 0x20a   :  { %724 = vmatprep.mubr.bf16.mxu1 %v527_v3  ;;  %1436 = vmatpush3.bf16.msra.mxu0 %v1723_v46 }
 0x20b   :  { %725 = vmatmul.mubr.bf16.gmra.mxu1 %v526_v4  ;;  %v1724_v4 = vld [vmem:[%s2158_s2 + $0xe0] sm:$0xff]  }
 0x20c   :  { %1437 = vmatprep.subr.bf16.mxu0 %v1724_v4 }
 0x237   :  { %v1473_v5 = vpop.f32.mrf.mxu0 }
 0x239   :  { %v766_v6 = vpop.f32.mrf.mxu0 }
 0x23b   :  { %v1474_v7 = vpop.f32.mrf.mxu0 }
 0x23c   :  { %v1726_v7 = vld [vmem:[%s2158_s2 + $0xd8] sm:$0xff]  }
 0x23d   :  { %v769_v32 = vpop.f32.mrf.mxu0 }
 0x2c3   :  { %v1411_v20 = vpop.f32.mrf.mxu1 }
 0x2c5   :  { %v1412_v22 = vpop.f32.mrf.mxu1 }
 0x2c6   :  { %v1413_v23 = vadd.f32 %v1412_v22, %v1411_v20 }
 0x2c7   :  { %v1414_v24 = vpop.f32.mrf.mxu1 }
 0x2c8   :  { %v719_v25 = vadd.f32 %v1413_v23, %v1313_v21 }
 0x2c9   :  { %v1415_v26 = vpop.f32.mrf.mxu1 }
 0x2ca   :  { %v767_v27 = vadd.f32 %v766_v6, %v719_v25  ;;  %v1416_v28 = vadd.f32 %v1415_v26, %v1414_v24  ;;  %v1725_v6 = vld [vmem:[%s2158_s2 + $0xa0] sm:$0xff]   ;;  %v1729_v24 = vld [vmem:[%s2158_s2 + $0x90] sm:$0xff]  }
 0x2cb   :  { %v1417_v29 = vpop.f32.mrf.mxu1  ;;  %1438 = vmatpush3.bf16.msra.mxu0 %v1725_v6 }
 0x2cc   :  { %v780_v30 = vmax.f32 %v767_v27, 0.0  ;;  %v722_v31 = vadd.f32 %v1416_v28, %v1313_v21  ;;  %1439 = vmatprep.subr.bf16.mxu0 %v1726_v7 }
 0x2cd   :  { %v1418_v33 = vpop.f32.mrf.mxu1 }
 0x2ce   :  { %783 = vst.msk [vmem:[#allocation2 + $0x4] sm:$0xff] %vm327_vm1, %v780_v30  ;;  %v770_v34 = vadd.f32 %v769_v32, %v722_v31  ;;  %v1419_v36 = vadd.f32 %v1418_v33, %v1417_v29 }
 0x2cf   :  { %v1420_v37 = vpop.f32.mrf.mxu1  ;;  %1440 = vmatpush3.bf16.msra.mxu0 %v1727_v16 }
 0x2d0   :  { %v781_v38 = vmax.f32 %v770_v34, 0.0  ;;  %v727_v39 = vadd.f32 %v1419_v36, %v1313_v21  ;;  %1441 = vmatprep.subr.bf16.mxu0 %v1728_v19 }
 0x2d1   :  { %v1421_v40 = vpop.f32.mrf.mxu1 }
 0x2d2   :  { %784 = vst.msk [vmem:[#allocation2 + $0xc] sm:$0xf] %vm330_vm2, %v781_v38  ;;  %v775_v41 = vadd.f32 %v1473_v5, %v727_v39 }
 0x2d3   :  { %785 = vst.msk [vmem:[#allocation2 + $0x18] sm:$0xf0] %vm338_vm3, %v781_v38  ;;  %1442 = vmatpush3.bf16.msra.mxu0 %v1729_v24 }
 0x2d4   :  { %v782_v44 = vmax.f32 %v775_v41, 0.0 }
 0x2d5   :  { %v789_v58 = vld [vmem:[#allocation2 + $0x1] sm:$0xff] }
 0x2d6   :  { %786 = vst.msk [vmem:[#allocation2 + $0x20] sm:$0xff] %vm327_vm1, %v782_v44  ;;  %v791_v18 = vld [vmem:[#allocation2 + $0x2] sm:$0xff] }
 0x2d7   :  { %v793_v26 = vld [vmem:[#allocation2 + $0x3] sm:$0xff] }
 0x2d8   :  { %v788_v44 = vld [vmem:[#allocation2 + $0x8] sm:$0xf] }
 0x2d9   :  { %v792_v48 = vld [vmem:[#allocation2 + $0xa] sm:$0xf]  ;;  %v800_v49 = vld [vmem:[#allocation2 + $0xe] sm:$0xf] }
 0x2da   :  { %v790_v35 = vld [vmem:[#allocation2 + $0x9] sm:$0xf]  ;;  %v1642_v50 = vpack.i.bf16 %v792_v48, %v800_v49  ;;  %v798_v51 = vld [vmem:[#allocation2 + $0xd] sm:$0xf] }
 0x2db   :  { %v1632_v8 = vpack.i.bf16 %v790_v35, %v798_v51  ;;  %v794_v9 = vld [vmem:[#allocation2 + $0xb] sm:$0xf]  ;;  %v802_v52 = vld [vmem:[#allocation2 + $0xf] sm:$0xf] }
 0x2dc   :  { %1643 = vrot.lane.b32.xlu1 %v1642_v50, %s1762_s6  ;;  %v797_v53 = vld [vmem:[#allocation2 + $0x5] sm:$0xff]  ;;  %v1657_v57 = vpack.i.bf16 %v794_v9, %v802_v52 }
 0x2dd   :  { %1633 = vrot.lane.b32.xlu0 %v1632_v8, %s1763_s7  ;;  %v881_v56 = vld [vmem:[#allocation2 + $0x20] sm:$0xff]  ;;  %v1637_v60 = vpack.i.bf16 %v789_v58, %v797_v53  ;;  %v803_v13 = vld [vmem:[#allocation2 + $0x8] sm:$0xff]  ;;  %v865_v8 = vld [vmem:[#allocation2 + $0x18] sm:$0xff] }
 0x2de   :  { %v951_v59 = vrot.slane %v881_v56, 4  ;;  %v869_v61 = vld [vmem:[#allocation2 + $0x1a] sm:$0xff]  ;;  %v799_v15 = vld [vmem:[#allocation2 + $0x6] sm:$0xff]  ;;  %v870_v30 = vld [vmem:[#allocation2 + $0x22] sm:$0xf] }
 0x2df   :  { %v877_v62 = vld [vmem:[#allocation2 + $0x1e] sm:$0xff]  ;;  %v1652_v20 = vpack.i.bf16 %v791_v18, %v799_v15  ;;  %v801_v23 = vld [vmem:[#allocation2 + $0x7] sm:$0xff] }
 0x2e0   :  { %1658 = vrot.lane.b32.xlu1 %v1657_v57, %s1764_s11  ;;  %v957_v12 = vsel %vm23_vm0, %v951_v59, %v956_v54  ;;  %v966_v63 = vsel %vm23_vm0, %v804_v55, %v951_v59  ;;  %v867_v0 = vld [vmem:[#allocation2 + $0x19] sm:$0xff]  ;;  %v1667_v5 = vpack.i.bf16 %v869_v61, %v877_v62  ;;  %v868_v21 = vld [vmem:[#allocation2 + $0x21] sm:$0xf]  ;;  %v876_v22 = vld [vmem:[#allocation2 + $0x25] sm:$0xf]  ;;  %v1662_v27 = vpack.i.bf16 %v793_v26, %v801_v23 }
 0x2e1   :  { %v875_v1 = vld [vmem:[#allocation2 + $0x1d] sm:$0xff]  ;;  %1638 = vrot.lane.b32.xlu0 %v1637_v60, %s1763_s7  ;;  %v969_v2 = vpack.c.bf16 %v966_v63, %v803_v13  ;;  %v972_v3 = vpack.c.bf16 %v957_v12, %v957_v12  ;;  %v1677_v25 = vpack.i.bf16 %v868_v21, %v876_v22  ;;  %v880_v29 = vld [vmem:[#allocation2 + $0x27] sm:$0xf]  ;;  %v796_v43 = vld [vmem:[#allocation2 + $0xc] sm:$0xf] }
 0x2e2   :  { %v1647_v10 = vpack.i.bf16 %v867_v0, %v875_v1  ;;  %v871_v11 = vld [vmem:[#allocation2 + $0x1b] sm:$0xff]  ;;  %v872_v28 = vld [vmem:[#allocation2 + $0x23] sm:$0xf] }
 0x2e3   :  { %1479 = vmatprep.mubr.msk.bf16.mxu1 %vm327_vm1, %v969_v2  ;;  %v879_v14 = vld [vmem:[#allocation2 + $0x1f] sm:$0xff]  ;;  %v1687_v32 = vpack.i.bf16 %v872_v28, %v880_v29 }
 0x2e4   :  { %1480 = vmatmul.mubr.msk.bf16.vlgmr.msra.gmra.mxu1 %vm327_vm1, %v972_v3  ;;  %1668 = vrot.lane.b32.xlu1 %v1667_v5, %s1762_s6  ;;  %v1672_v17 = vpack.i.bf16 %v871_v11, %v879_v14  ;;  %v878_v31 = vld [vmem:[#allocation2 + $0x26] sm:$0xf]  ;;  %v873_v9 = vld [vmem:[#allocation2 + $0x1c] sm:$0xff] }
 0x2e5   :  { %1648 = vrot.lane.b32.xlu0 %v1647_v10, %s1763_s7  ;;  %v1682_v33 = vpack.i.bf16 %v870_v30, %v878_v31  ;;  %v795_v4 = vld [vmem:[#allocation2 + $0x4] sm:$0xff] }
 0x2e6   :  { %v787_v5 = vld [vmem:[#allocation2] sm:$0xff] }
 0x2e8   :  { %1673 = vrot.lane.b32.xlu1 %v1672_v17, %s1764_s11 }
 0x2e9   :  { %1653 = vrot.lane.b32.xlu0 %v1652_v20, %s1762_s6 }
 0x2ec   :  { %1678 = vrot.lane.b32.xlu1 %v1677_v25, %s1763_s7 }
 0x2ed   :  { %1663 = vrot.lane.b32.xlu0 %v1662_v27, %s1764_s11 }
 0x2f0   :  { %1688 = vrot.lane.b32.xlu1 %v1687_v32, %s1764_s11 }
 0x2f1   :  { %1683 = vrot.lane.b32.xlu0 %v1682_v33, %s1762_s6 }
 0x34e   :  { %v1644_v34 = vpop.permute.xlu1 %1643 }
 0x34f   :  { %v1634_v36 = vpop.permute.xlu0 %1633  ;;  %v1646_v49 = vunpack.i.h.bf16 %v1644_v34  ;;  %v1645_v35 = vunpack.i.l.bf16 %v1644_v34  ;;  %v866_v34 = vld [vmem:[#allocation2 + $0x20] sm:$0xf] }
 0x350   :  { %v1636_v39 = vunpack.i.h.bf16 %v1634_v36  ;;  %v1635_v40 = vunpack.i.l.bf16 %v1634_v36  ;;  %v874_v36 = vld [vmem:[#allocation2 + $0x24] sm:$0xf] }
 0x352   :  { %v1659_v37 = vpop.permute.xlu1 %1658  ;;  %v854_v50 = vsel %vm327_vm1, %v788_v44, %v1636_v39  ;;  %v860_v51 = vsel %vm327_vm1, %v796_v43, %v1635_v40 }
 0x353   :  { %v1639_v38 = vpop.permute.xlu0 %1638  ;;  %v1661_v52 = vunpack.i.h.bf16 %v1659_v37  ;;  %v1660_v53 = vunpack.i.l.bf16 %v1659_v37  ;;  %v856_v2 = vsel %vm409_vm4, %v854_v50, %v1646_v49  ;;  %v862_v3 = vsel %vm409_vm4, %v860_v51, %v1645_v35 }
 0x354   :  { %v1641_v57 = vunpack.i.h.bf16 %v1639_v38  ;;  %v1640_v58 = vunpack.i.l.bf16 %v1639_v38 }
 0x355   :  { %v858_v11 = vsel %vm412_vm5, %v856_v2, %v1661_v52  ;;  %v864_v14 = vsel %vm412_vm5, %v862_v3, %v1660_v53  ;;  %v1370_v52 = vld [vmem:[%s2159_s3 + $0x2] ss:$0 sm:$0xff]  ;;  %s1765_s3 = smov [#allocation3]  }
 0x356   :  { %v1669_v41 = vpop.permute.xlu1 %1668  ;;  %v853_v15 = vsel %vm327_vm1, %v787_v5, %v1641_v57  ;;  %v859_v16 = vsel %vm327_vm1, %v795_v4, %v1640_v58 }
 0x357   :  { %v1649_v42 = vpop.permute.xlu0 %1648  ;;  %v1671_v45 = vunpack.i.h.bf16 %v1669_v41  ;;  %v1670_v46 = vunpack.i.l.bf16 %v1669_v41 }
 0x358   :  { %v1651_v47 = vunpack.i.h.bf16 %v1649_v42  ;;  %v1650_v48 = vunpack.i.l.bf16 %v1649_v42 }
 0x35a   :  { %v931_v54 = vsel %vm327_vm1, %v865_v8, %v1651_v47  ;;  %v937_v55 = vsel %vm327_vm1, %v873_v9, %v1650_v48  ;;  %v1674_v56 = vpop.permute.xlu1 %1673 }
 0x35b   :  { %v1676_v59 = vunpack.i.h.bf16 %v1674_v56  ;;  %v1675_v60 = vunpack.i.l.bf16 %v1674_v56  ;;  %v1654_v61 = vpop.permute.xlu0 %1653  ;;  %v933_v62 = vsel %vm409_vm4, %v931_v54, %v1671_v45  ;;  %v939_v13 = vsel %vm409_vm4, %v937_v55, %v1670_v46 }
 0x35c   :  { %v1656_v0 = vunpack.i.h.bf16 %v1654_v61  ;;  %v1655_v1 = vunpack.i.l.bf16 %v1654_v61 }
 0x35d   :  { %v935_v12 = vsel %vm412_vm5, %v933_v62, %v1676_v59  ;;  %v941_v63 = vsel %vm412_vm5, %v939_v13, %v1675_v60 }
 0x35e   :  { %v949_v6 = vrot.slane %v935_v12, 4  ;;  %v950_v7 = vrot.slane %v941_v63, 4  ;;  %v1679_v10 = vpop.permute.xlu1 %1678  ;;  %v855_v22 = vsel %vm409_vm4, %v853_v15, %v1656_v0  ;;  %v861_v23 = vsel %vm409_vm4, %v859_v16, %v1655_v1 }
 0x35f   :  { %v1664_v17 = vpop.permute.xlu0 %1663  ;;  %v1681_v24 = vunpack.i.h.bf16 %v1679_v10  ;;  %v1680_v25 = vunpack.i.l.bf16 %v1679_v10 }
 0x360   :  { %v1666_v18 = vunpack.i.h.bf16 %v1664_v17  ;;  %v1665_v19 = vunpack.i.l.bf16 %v1664_v17  ;;  %v964_v20 = vsel %vm23_vm0, %v858_v11, %v949_v6  ;;  %v965_v21 = vsel %vm23_vm0, %v864_v14, %v950_v7 }
 0x361   :  { %v932_v39 = vsel %vm327_vm1, %v866_v34, %v1681_v24  ;;  %v938_v40 = vsel %vm327_vm1, %v874_v36, %v1680_v25 }
 0x362   :  { %v857_v26 = vsel %vm412_vm5, %v855_v22, %v1666_v18  ;;  %v1689_v27 = vpop.permute.xlu1 %1688  ;;  %v863_v28 = vsel %vm412_vm5, %v861_v23, %v1665_v19 }
 0x363   :  { %v967_v29 = vpack.c.bf16 %v964_v20, %v857_v26  ;;  %v1691_v30 = vunpack.i.h.bf16 %v1689_v27  ;;  %v1690_v31 = vunpack.i.l.bf16 %v1689_v27  ;;  %v1684_v32 = vpop.permute.xlu0 %1683  ;;  %v968_v33 = vpack.c.bf16 %v965_v21, %v863_v28 }
 0x364   :  { %v1686_v37 = vunpack.i.h.bf16 %v1684_v32  ;;  %v1685_v38 = vunpack.i.l.bf16 %v1684_v32 }
 0x365   :  { %1161 = vmatprep.mubr.bf16.mxu0 %v968_v33 }
 0x366   :  { %v934_v41 = vsel %vm409_vm4, %v932_v39, %v1686_v37  ;;  %v940_v42 = vsel %vm409_vm4, %v938_v40, %v1685_v38  ;;  %1162 = vmatmul.mubr.bf16.vlgmr.msra.gmra.mxu0 %v967_v29 }
 0x367   :  { %v936_v43 = vsel %vm412_vm5, %v934_v41, %v1691_v30  ;;  %v942_v44 = vsel %vm412_vm5, %v940_v42, %v1690_v31 }
 0x368   :  { %v954_v45 = vrot.slane %v942_v44, 4  ;;  %v952_v46 = vrot.slane %v936_v43, 4 }
 0x36a   :  { %v955_v47 = vsel %vm23_vm0, %v950_v7, %v954_v45  ;;  %v953_v48 = vsel %vm23_vm0, %v949_v6, %v952_v46 }
 0x36b   :  { %v971_v49 = vpack.c.bf16 %v955_v47, %v955_v47  ;;  %v970_v35 = vpack.c.bf16 %v953_v48, %v953_v48 }
 0x36d   :  { %1169 = vmatprep.mubr.bf16.mxu0 %v971_v49 }
 0x36e   :  { %1170 = vmatmul.mubr.bf16.gmra.mxu0 %v970_v35 }
 0x3a4   :  { %v1481_v50 = vpop.f32.mrf.mxu1 }
 0x3a6   :  { %v1211_v51 = vpop.f32.mrf.mxu1 }
 0x3a8   :  { %v1482_v8 = vpop.f32.mrf.mxu1 }
 0x3aa   :  { %v1214_v12 = vpop.f32.mrf.mxu1 }
 0x426   :  { %v1443_v9 = vpop.f32.mrf.mxu0 }
 0x428   :  { %v1444_v53 = vpop.f32.mrf.mxu0 }
 0x429   :  { %v1445_v54 = vadd.f32 %v1444_v53, %v1443_v9 }
 0x42a   :  { %v1446_v55 = vpop.f32.mrf.mxu0 }
 0x42b   :  { %v1164_v56 = vadd.f32 %v1445_v54, %v1370_v52 }
 0x42c   :  { %v1447_v57 = vpop.f32.mrf.mxu0 }
 0x42d   :  { %v1212_v58 = vadd.f32 %v1211_v51, %v1164_v56  ;;  %v1448_v59 = vadd.f32 %v1447_v57, %v1446_v55 }
 0x42e   :  { %v1449_v60 = vpop.f32.mrf.mxu0 }
 0x42f   :  { %v1225_v61 = vmax.f32 %v1212_v58, 0.0  ;;  %v1167_v62 = vadd.f32 %v1448_v59, %v1370_v52 }
 0x430   :  { %v1450_v13 = vpop.f32.mrf.mxu0 }
 0x431   :  { %v1229_v63 = vrot.slane %v1225_v61, 1  ;;  %v1451_v0 = vadd.f32 %v1450_v13, %v1449_v60  ;;  %v1215_v1 = vadd.f32 %v1214_v12, %v1167_v62  ;;  %v1232_v5 = vrot.slane %v1225_v61, 2 }
 0x432   :  { %v1452_v2 = vpop.f32.mrf.mxu0 }
 0x433   :  { %v1172_v3 = vadd.f32 %v1451_v0, %v1370_v52  ;;  %v1231_v4 = vadd.f32 %v1229_v63, %v1225_v61  ;;  %v1226_v11 = vmax.f32 %v1215_v1, 0.0 }
 0x434   :  { %v1453_v6 = vpop.f32.mrf.mxu0 }
 0x435   :  { %v1220_v7 = vadd.f32 %v1481_v50, %v1172_v3  ;;  %v1234_v10 = vadd.f32 %v1232_v5, %v1231_v4  ;;  %v1236_v17 = vrot.slane %v1226_v11, 2  ;;  %v1239_v21 = vrot.slane %v1226_v11, 1 }
 0x437   :  { %v1227_v14 = vmax.f32 %v1220_v7, 0.0  ;;  %v1244_v15 = vrot.slane %v1234_v10, 3  ;;  %v1238_v26 = vadd.f32 %v1236_v17, %v1231_v4  ;;  %v1241_v27 = vadd.f32 %v1239_v21, %v1226_v11 }
 0x439   :  { %v1262_v16 = vrot.slane %v1227_v14, 1  ;;  %1245 = vrot.lane.b32.xlu0 %v1244_v15, %s1763_s7  ;;  %v1265_v18 = vrot.slane %v1227_v14, 2  ;;  %v1249_v29 = vrot.slane %v1238_v26, 6  ;;  %v1242_v30 = vadd.f32 %v1241_v27, %v1236_v17 }
 0x43b   :  { %v1268_v19 = vadd.f32 %v1262_v16, %v1227_v14  ;;  %v1264_v20 = vadd.f32 %v1262_v16, %v1226_v11  ;;  %v1254_v31 = vrot.slane %v1242_v30, 1 }
 0x43d   :  { %v1269_v22 = vadd.f32 %v1268_v19, %v1265_v18  ;;  %v1267_v23 = vadd.f32 %v1265_v18, %v1264_v20 }
 0x43f   :  { %v1276_v24 = vrot.slane %v1269_v22, 6  ;;  %v1271_v25 = vrot.slane %v1267_v23, 3  ;;  %v1280_v28 = vrot.slane %v1269_v22, 1 }
 0x441   :  { %1277 = vrot.lane.b32.xlu1 %v1276_v24, %s1762_s6  ;;  %1272 = vrot.lane.b32.xlu0 %v1271_v25, %s1763_s7  ;;  %s1298_s7 = sshll.u32 %s1765_s3, 4  ;;  %s1299_s7 = int_to_ptr.vmem [resolvable:$true] %s1298_s7 }
 0x442   :  { %p1735_p1 = scmp.lt.s32.totalorder %s1299_s7, %s1299_s7 }
 0x445   :  { %1281 = vrot.lane.b32.xlu1 %v1280_v28, %s1764_s11  ;;  %1250 = vrot.lane.b32.xlu0 %v1249_v29, %s1762_s6  ;;  %s1730_s6 = scalar_lea.vmem %s1299_s7, 32 }
 0x446   :  { %p1731_p0 = scmp.ne.s32.totalorder %s1299_s7, %s1730_s6  ;;  %p1736_p2 = scmp.lt.s32.totalorder %s1730_s6, %s1730_s6 }
 0x448   :  { %p1737_p3 = por %p1736_p2, %p1735_p1 }
 0x449   :  { %1255 = vrot.lane.b32.xlu1 %v1254_v31, %s1764_s11 }
 0x44a   :  { %p1738_p4 = pnand %p1737_p3, %p1731_p0 }
 0x4ab   :  { %v1246_v32 = vpop.permute.xlu0 %1245 }
 0x4ac   :  { %v1258_v41 = vsel %vm327_vm1, %v1234_v10, %v1246_v32 }
 0x4b3   :  { %v1278_v33 = vpop.permute.xlu1 %1277  ;;  %v1273_v34 = vpop.permute.xlu0 %1272 }
 0x4b4   :  { %v1284_v36 = vsel %vm327_vm1, %v1242_v30, %v1273_v34 }
 0x4b5   :  { %v1285_v38 = vsel %vm409_vm4, %v1284_v36, %v1278_v33 }
 0x4b7   :  { %v1282_v37 = vpop.permute.xlu1 %1281  ;;  %v1251_v40 = vpop.permute.xlu0 %1250 }
 0x4b8   :  { %v1286_v39 = vsel %vm412_vm5, %v1285_v38, %v1282_v37  ;;  %v1259_v43 = vsel %vm409_vm4, %v1258_v41, %v1251_v40 }
 0x4b9   :  { %v1288_v42 = vrot.slane %v1286_v39, 3 }
 0x4bb   :  { %v1256_v44 = vpop.permute.xlu1 %1255 }
 0x4bc   :  { %v1260_v45 = vsel %vm412_vm5, %v1259_v43, %v1256_v44 }
 0x4bd   :  { %v1290_v46 = vsel %vm95_vm6, %v1260_v45, %v1288_v42 }
 0x4be   :  { %1291 = vst [vmem:[#allocation3] sm:$0x3] %v1290_v46 }
 0x4bf   :  { %1741 = shalt.err (!%p1738_p4)
}
 0x4c0   :  { %1301 = dma.vmem_to_hbm [thread:$0]  %s1299_s7, 32, %s2160_s4, [#allocation4]  }
 0x4c1   :  { %1750 = dma.done.wait [#allocation4], 32  }
 0x4c2   :  { %1751 = vsyncadd [#allocation4], 4294967264 }
 0x4c3   :  { %1305 = vsyncpa [#allocation4], 1 }

</bundles_post_ra>
